<compile_context>
chip_gen: v7x
topology: tpu7x:2x2x1
jax: 0.10.0
libtpu: 0.0.40
codegen_flags: <defaults>
</compile_context>

<pallas_src>
import functools
import math

import jax
import jax.numpy as jnp
from jax.experimental import pallas as pl
from jax.experimental.pallas import tpu as pltpu

LN_EPS = 1e-5
F32 = jnp.float32
BF16 = jnp.bfloat16


def _layernorm(y, g, b):
    mu = jnp.mean(y, axis=-1, keepdims=True)
    var = jnp.mean((y - mu) ** 2, axis=-1, keepdims=True)
    return (y - mu) * jax.lax.rsqrt(var + LN_EPS) * g + b


# ----------------------------------------------------------------------------
# Kernel 1: embedding gather (one-hot matmul, vocab on the lane axis) + positions
# ----------------------------------------------------------------------------
def embed_kernel(tok_ref, tok_emb_ref, pos_emb_ref, x_ref):
    tb, t = tok_ref.shape
    v, _ = tok_emb_ref.shape
    tok = tok_ref[...]                                                  # (TB, T) int32
    vocab_ids = jax.lax.broadcasted_iota(jnp.int32, (tb, t, v), 2)      # vocab on lanes
    onehot = (vocab_ids == tok[:, :, None]).astype(BF16)                # (TB, T, V) bf16
    gathered = jnp.einsum('btv,vk->btk', onehot, tok_emb_ref[...],
                          preferred_element_type=F32)                   # exact bf16-table rows
    x_ref[...] = (gathered + pos_emb_ref[...][None, :, :]).astype(x_ref.dtype)


# ----------------------------------------------------------------------------
# Kernel 2: one fused encoder block (masked MHA + LN + chunked MLP + LN)
# ----------------------------------------------------------------------------
def encoder_block_kernel(x_ref, wqkv_ref, wo_ref, bo_ref, g1_ref, b1_ref,
                         wf1_ref, bf1_ref, wf2_ref, bf2_ref, g2_ref, b2_ref,
                         out_ref, *, heads, ff_chunk):
    tb, t, k = x_ref.shape
    hd = k // heads
    scale = 1.0 / math.sqrt(hd)

    x = x_ref[...]                                                      # bf16 (TB, T, K)

    # Fused QKV projection: one full-K-depth matmul, f32 accumulation.
    qkv = jnp.einsum('btk,kn->btn', x, wqkv_ref[...], preferred_element_type=F32)
    q, kk, v = qkv[:, :, :k], qkv[:, :, k:2 * k], qkv[:, :, 2 * k:]

    # Causal mask: query position may attend to key positions <= itself.
    qi = jax.lax.broadcasted_iota(jnp.int32, (t, t), 0)
    ki = jax.lax.broadcasted_iota(jnp.int32, (t, t), 1)
    allowed = (ki <= qi)[None, :, :]                                    # (1, T, T)

    # TODO(synk): per-head loop; production path = heads-on-grid flash kernel or hd % 128 == 0.
    head_outs = []
    for h in range(heads):                                              # static unroll
        lo = h * hd
        qh = q[:, :, lo:lo + hd].astype(BF16)
        kh = kk[:, :, lo:lo + hd].astype(BF16)
        vh = v[:, :, lo:lo + hd].astype(BF16)
        s = jnp.einsum('bqd,bkd->bqk', qh, kh, preferred_element_type=F32) * scale
        s = jnp.where(allowed, s, -1e30)
        m = jnp.max(s, axis=-1, keepdims=True)
        p = jnp.exp(s - m)
        p = p * pl.reciprocal(jnp.sum(p, axis=-1, keepdims=True), approx=True)
        head_outs.append(jnp.einsum('bqk,bkd->bqd', p.astype(BF16), vh,
                                    preferred_element_type=F32))
    # Single full-K-depth output projection on the concatenated heads.
    o_cat = jnp.concatenate(head_outs, axis=-1).astype(BF16)            # (TB, T, K)
    attn = jnp.einsum('btk,kn->btn', o_cat, wo_ref[...],
                      preferred_element_type=F32) + bo_ref[...]

    x1 = _layernorm(attn + x.astype(F32), g1_ref[...], b1_ref[...])     # f32 (TB, T, K)
    x1_b = x1.astype(BF16)

    # MLP with the 4K hidden dim processed in ff_chunk-wide slices.
    n_hidden = wf1_ref.shape[1]
    ff = jnp.zeros((tb, t, k), dtype=F32)
    for c0 in range(0, n_hidden, ff_chunk):
        h1 = jnp.einsum('btk,kn->btn', x1_b, wf1_ref[:, c0:c0 + ff_chunk],
                        preferred_element_type=F32) + bf1_ref[:, c0:c0 + ff_chunk]
        h1 = jnp.maximum(h1, 0.0).astype(BF16)
        ff = ff + jnp.einsum('btn,nk->btk', h1, wf2_ref[c0:c0 + ff_chunk, :],
                             preferred_element_type=F32)
    ff = ff + bf2_ref[...]

    out_ref[...] = _layernorm(ff + x1, g2_ref[...], b2_ref[...]).astype(out_ref.dtype)


# ----------------------------------------------------------------------------
# Kernel 3: final LayerNorm + (V-tiled) projection to vocabulary logits
# ----------------------------------------------------------------------------
def head_kernel(x_ref, g_ref, b_ref, wp_ref, bp_ref, out_ref):
    xn = _layernorm(x_ref[...].astype(F32), g_ref[...], b_ref[...])
    logits = jnp.einsum('btk,kv->btv', xn.astype(BF16), wp_ref[...],
                        preferred_element_type=F32) + bp_ref[...]
    out_ref[...] = logits.astype(out_ref.dtype)


# ----------------------------------------------------------------------------
# Wrapper
# ----------------------------------------------------------------------------
def _const_spec(shape):
    nd = len(shape)
    return pl.BlockSpec(shape, lambda *idx, _nd=nd: (0,) * _nd)


def _largest_divisor_at_most(n, cap):
    d = max(1, min(n, cap))
    while n % d:
        d -= 1
    return d


def _nbytes(shape, dtype):
    return int(math.prod(shape)) * jnp.dtype(dtype).itemsize


def _compiler_params(sem, need_bytes):
    # Explicit scoped-VMEM limit: never below the 32 MiB default, never above v7x's 64 MiB.
    lim = int(min(64 << 20, max(32 << 20, 2 * need_bytes + (8 << 20))))
    return pltpu.CompilerParams(dimension_semantics=sem, vmem_limit_bytes=lim)


def grt_transformer_forward(tokens, params, *, heads, ff_chunk=256):
    tokens = tokens.astype(jnp.int32)
    B, T = tokens.shape
    V, K = params['token_emb'].shape
    assert K % heads == 0
    H4 = params['blocks'][0]['w_ff1'].shape[1]
    if H4 % ff_chunk:
        ff_chunk = H4

    # Batch tile: largest divisor of B giving a grid of >= 2 steps (pipelining / v7x 2 TCs).
    tb = _largest_divisor_at_most(B, max(1, min(128, B // 2)))
    grid = (B // tb,)
    # Vocab tile for the logits projection (bounded weight slice, lane-dense output).
    vt = _largest_divisor_at_most(V, 2048)

    tok_emb = params['token_emb'].astype(BF16)
    pos_emb = params['pos_emb'].astype(F32)

    # --- 1) embeddings (tiny-vocab one-hot path; whole batch per step — it is cheap) ---------
    emb_bytes = (_nbytes((B, T), jnp.int32) + _nbytes((V, K), BF16)
                 + _nbytes((T, K), F32) + _nbytes((B, T, K), BF16))
    x = pl.pallas_call(
        embed_kernel,
        out_shape=jax.ShapeDtypeStruct((B, T, K), BF16),
        grid_spec=pltpu.PrefetchScalarGridSpec(
            num_scalar_prefetch=0, grid=(1,),
            in_specs=[pl.BlockSpec((B, T), lambda i: (0, 0)),
                      _const_spec((V, K)),
                      _const_spec((T, K))],
            out_specs=pl.BlockSpec((B, T, K), lambda i: (0, 0, 0))),
        compiler_params=_compiler_params(("arbitrary",), emb_bytes),
    )(tokens, tok_emb, pos_emb)

    # --- 2) encoder blocks: one fused kernel per layer, bf16 activations round-trip in place --
    blk_bytes = (2 * _nbytes((tb, T, K), BF16) + _nbytes((K, 3 * K), BF16)
                 + _nbytes((K, K), BF16) + _nbytes((K, H4), BF16) + _nbytes((H4, K), BF16)
                 + 8 * _nbytes((1, K), F32) + _nbytes((1, H4), F32))
    cp_block = _compiler_params(("parallel",), blk_bytes)

    for layer in params['blocks']:
        wqkv = jnp.concatenate([layer['wq'], layer['wk'], layer['wv']], axis=1).astype(BF16)
        x = pl.pallas_call(
            functools.partial(encoder_block_kernel, heads=heads, ff_chunk=ff_chunk),
            out_shape=jax.ShapeDtypeStruct((B, T, K), BF16),
            grid_spec=pltpu.PrefetchScalarGridSpec(
                num_scalar_prefetch=0, grid=grid,
                in_specs=[pl.BlockSpec((tb, T, K), lambda i: (i, 0, 0)),
                          _const_spec((K, 3 * K)),     # wqkv
                          _const_spec((K, K)),         # wo
                          _const_spec((1, K)),         # bo
                          _const_spec((1, K)),         # ln1 gamma
                          _const_spec((1, K)),         # ln1 beta
                          _const_spec((K, H4)),        # ff W1
                          _const_spec((1, H4)),        # ff b1
                          _const_spec((H4, K)),        # ff W2
                          _const_spec((1, K)),         # ff b2
                          _const_spec((1, K)),         # ln2 gamma
                          _const_spec((1, K))],        # ln2 beta
                out_specs=pl.BlockSpec((tb, T, K), lambda i: (i, 0, 0))),
            input_output_aliases={0: 0},               # reuse the activation HBM slab in place
            compiler_params=cp_block,
        )(x, wqkv, layer['wo'].astype(BF16), layer['bo'].astype(F32),
          layer['g1'].astype(F32), layer['b1'].astype(F32),
          layer['w_ff1'].astype(BF16), layer['b_ff1'].astype(F32),
          layer['w_ff2'].astype(BF16), layer['b_ff2'].astype(F32),
          layer['g2'].astype(F32), layer['b2'].astype(F32))

    # --- 3) final LayerNorm + V-tiled vocab projection ----------------------------------------
    head_bytes = (_nbytes((tb, T, K), BF16) + _nbytes((K, vt), BF16) + _nbytes((1, vt), F32)
                  + _nbytes((tb, T, vt), F32) + 2 * _nbytes((1, K), F32))
    logits = pl.pallas_call(
        head_kernel,
        out_shape=jax.ShapeDtypeStruct((B, T, V), F32),
        grid_spec=pltpu.PrefetchScalarGridSpec(
            num_scalar_prefetch=0, grid=(B // tb, V // vt),
            in_specs=[pl.BlockSpec((tb, T, K), lambda i, j: (i, 0, 0)),
                      pl.BlockSpec((1, K), lambda i, j: (0, 0)),
                      pl.BlockSpec((1, K), lambda i, j: (0, 0)),
                      pl.BlockSpec((K, vt), lambda i, j: (0, j)),
                      pl.BlockSpec((1, vt), lambda i, j: (0, j))],
            out_specs=pl.BlockSpec((tb, T, vt), lambda i, j: (i, 0, j))),
        compiler_params=_compiler_params(("parallel", "parallel"), head_bytes),
    )(x, params['ln_g'].astype(F32), params['ln_b'].astype(F32),
      params['w_probs'].astype(BF16), params['b_probs'].astype(F32))
    return logits


# ----------------------------------------------------------------------------
# Pure-JAX reference (mirrors the kernel's bf16-matmul / f32-accumulate policy)
# ----------------------------------------------------------------------------
def grt_transformer_reference(tokens, params, *, heads):
    B, T = tokens.shape
    V, K = params['token_emb'].shape
    hd = K // heads
    scale = 1.0 / math.sqrt(hd)

    def mm(eq, a, b):
        return jnp.einsum(eq, a.astype(BF16), b.astype(BF16), preferred_element_type=F32)

    x = (params['token_emb'].astype(BF16).astype(F32)[tokens]
         + params['pos_emb'].astype(F32)[None, :T]).astype(BF16)
    allowed = (jnp.arange(T)[None, :] <= jnp.arange(T)[:, None])[None]

    for layer in params['blocks']:
        q = mm('btk,kn->btn', x, layer['wq'])
        k = mm('btk,kn->btn', x, layer['wk'])
        v = mm('btk,kn->btn', x, layer['wv'])
        outs = []
        for h in range(heads):
            lo = h * hd
            s = mm('bqd,bkd->bqk', q[..., lo:lo + hd], k[..., lo:lo + hd]) * scale
            s = jnp.where(allowed, s, -1e30)
            p = jax.nn.softmax(s, axis=-1)
            outs.append(mm('bqk,bkd->bqd', p, v[..., lo:lo + hd]))
        attn = mm('btk,kn->btn', jnp.concatenate(outs, axis=-1), layer['wo']) + layer['bo']
        x1 = _layernorm(attn + x.astype(F32), layer['g1'], layer['b1'])
        h1 = jnp.maximum(mm('btk,kn->btn', x1, layer['w_ff1']) + layer['b_ff1'], 0.0)
        ff = mm('btn,nk->btk', h1, layer['w_ff2']) + layer['b_ff2']
        x = _layernorm(ff + x1, layer['g2'], layer['b2']).astype(BF16)

    xn = _layernorm(x.astype(F32), params['ln_g'], params['ln_b'])
    return mm('btk,kv->btv', xn, params['w_probs']) + params['b_probs']


if __name__ == "__main__":
    B, T = 2, 8          # batch, seq_len
    K = 128              # embedding dim (lane-dense: multiple of 128)
    HEADS = 4
    DEPTH = 2
    V = 128              # token_count (lane-dense logits)

    keys = iter(jax.random.split(jax.random.PRNGKey(0), 64))

    def randn(shape, scale):
        return jax.random.normal(next(keys), shape, dtype=jnp.float32) * scale

    tokens = jax.random.randint(next(keys), (B, T), 0, V, dtype=jnp.int32)

    blocks = []
    for _ in range(DEPTH):
        blocks.append(dict(
            wq=randn((K, K), 0.1), wk=randn((K, K), 0.1), wv=randn((K, K), 0.1),
            wo=randn((K, K), 0.1), bo=randn((1, K), 0.1),
            g1=1.0 + randn((1, K), 0.1), b1=randn((1, K), 0.1),
            w_ff1=randn((K, 4 * K), 0.1), b_ff1=randn((1, 4 * K), 0.1),
            w_ff2=randn((4 * K, K), 0.1), b_ff2=randn((1, K), 0.1),
            g2=1.0 + randn((1, K), 0.1), b2=randn((1, K), 0.1),
        ))
    params = dict(
        token_emb=randn((V, K), 1.0),
        pos_emb=randn((T, K), 1.0),
        blocks=blocks,
        ln_g=1.0 + randn((1, K), 0.1),
        ln_b=randn((1, K), 0.1),
        w_probs=randn((K, V), 0.1),
        b_probs=randn((1, V), 0.1),
    )

    fwd = jax.jit(functools.partial(grt_transformer_forward, heads=HEADS))
    out = jax.block_until_ready(fwd(tokens, params))

    ref = grt_transformer_reference(tokens, params, heads=HEADS)
    assert out.shape == (B, T, V), out.shape
    # bf16 MXU inputs + approx-reciprocal softmax normalization -> loose-ish tolerance.
    assert jnp.allclose(out, ref, atol=3e-2, rtol=3e-2), (
        float(jnp.max(jnp.abs(out - ref))))

    print("KERNEL_OK")
</pallas_src>

<mosaic_0001>
module attributes {stable_mosaic.version = 11 : i64} {
  func.func @encoder_block_kernel(%arg0: i32, %arg1: memref<1x8x128xbf16, #tpu.memory_space<vmem>>, %arg2: memref<128x384xbf16, #tpu.memory_space<vmem>>, %arg3: memref<128x128xbf16, #tpu.memory_space<vmem>>, %arg4: memref<1x128xf32, #tpu.memory_space<vmem>>, %arg5: memref<1x128xf32, #tpu.memory_space<vmem>>, %arg6: memref<1x128xf32, #tpu.memory_space<vmem>>, %arg7: memref<128x512xbf16, #tpu.memory_space<vmem>>, %arg8: memref<1x512xf32, #tpu.memory_space<vmem>>, %arg9: memref<512x128xbf16, #tpu.memory_space<vmem>>, %arg10: memref<1x128xf32, #tpu.memory_space<vmem>>, %arg11: memref<1x128xf32, #tpu.memory_space<vmem>>, %arg12: memref<1x128xf32, #tpu.memory_space<vmem>>, %arg13: memref<1x8x128xbf16, #tpu.memory_space<vmem>>) attributes {dimension_semantics = [#tpu.dimension_semantics<parallel>], iteration_bounds = array<i64: 2>, scalar_prefetch = 0 : i64, scratch_operands = 0 : i64, tpu.core_type = #tpu.core_type<tc>, window_params = [{transform_indices = @transform_0, window_bounds = array<i64: 1, 8, 128>}, {pipeline_mode = #tpu.pipeline_mode<synchronous>, transform_indices = @transform_1, window_bounds = array<i64: 128, 384>}, {pipeline_mode = #tpu.pipeline_mode<synchronous>, transform_indices = @transform_2, window_bounds = array<i64: 128, 128>}, {pipeline_mode = #tpu.pipeline_mode<synchronous>, transform_indices = @transform_3, window_bounds = array<i64: 1, 128>}, {pipeline_mode = #tpu.pipeline_mode<synchronous>, transform_indices = @transform_4, window_bounds = array<i64: 1, 128>}, {pipeline_mode = #tpu.pipeline_mode<synchronous>, transform_indices = @transform_5, window_bounds = array<i64: 1, 128>}, {pipeline_mode = #tpu.pipeline_mode<synchronous>, transform_indices = @transform_6, window_bounds = array<i64: 128, 512>}, {pipeline_mode = #tpu.pipeline_mode<synchronous>, transform_indices = @transform_7, window_bounds = array<i64: 1, 512>}, {pipeline_mode = #tpu.pipeline_mode<synchronous>, transform_indices = @transform_8, window_bounds = array<i64: 512, 128>}, {pipeline_mode = #tpu.pipeline_mode<synchronous>, transform_indices = @transform_9, window_bounds = array<i64: 1, 128>}, {pipeline_mode = #tpu.pipeline_mode<synchronous>, transform_indices = @transform_10, window_bounds = array<i64: 1, 128>}, {pipeline_mode = #tpu.pipeline_mode<synchronous>, transform_indices = @transform_11, window_bounds = array<i64: 1, 128>}, {transform_indices = @transform_12, window_bounds = array<i64: 1, 8, 128>}]} {
    %c0 = arith.constant 0 : index
    %c0_0 = arith.constant 0 : index
    %c0_1 = arith.constant 0 : index
    %0 = vector.load %arg1[%c0, %c0_0, %c0_1] : memref<1x8x128xbf16, #tpu.memory_space<vmem>>, vector<1x8x128xbf16>
    %c0_2 = arith.constant 0 : index
    %c0_3 = arith.constant 0 : index
    %1 = vector.load %arg2[%c0_2, %c0_3] : memref<128x384xbf16, #tpu.memory_space<vmem>>, vector<128x384xbf16>
    "tpu.trace_start"() <{level = 10 : i32, message = "btk,kn->btn"}> : () -> ()
    %cst = arith.constant dense<0.000000e+00> : vector<1x8x384xf32>
    %2 = tpu.matmul %0, %1, %cst {dimension_numbers = #tpu.dot_dimension_numbers<[2], [0], [0, 1], [1], [0, 0, 0, 1, 1, 1], [], []>} : vector<1x8x128xbf16>, vector<128x384xbf16>, vector<1x8x384xf32> -> vector<1x8x384xf32>
    "tpu.trace_stop"() : () -> ()
    %3 = vector.extract_strided_slice %2 {offsets = [0, 0, 0], sizes = [1, 8, 128], strides = [1, 1, 1]} : vector<1x8x384xf32> to vector<1x8x128xf32>
    %4 = vector.extract_strided_slice %2 {offsets = [0, 0, 128], sizes = [1, 8, 128], strides = [1, 1, 1]} : vector<1x8x384xf32> to vector<1x8x128xf32>
    %5 = vector.extract_strided_slice %2 {offsets = [0, 0, 256], sizes = [1, 8, 128], strides = [1, 1, 1]} : vector<1x8x384xf32> to vector<1x8x128xf32>
    %6 = tpu.iota {dimensions = array<i32: 0>} : vector<8x8xi32>
    %7 = tpu.iota {dimensions = array<i32: 1>} : vector<8x8xi32>
    %8 = arith.cmpi sle, %7, %6 : vector<8x8xi32>
    %9 = vector.shape_cast %8 : vector<8x8xi1> to vector<1x8x8xi1>
    %10 = vector.extract_strided_slice %3 {offsets = [0, 0, 0], sizes = [1, 8, 32], strides = [1, 1, 1]} : vector<1x8x128xf32> to vector<1x8x32xf32>
    %11 = arith.truncf %10 : vector<1x8x32xf32> to vector<1x8x32xbf16>
    %12 = vector.extract_strided_slice %4 {offsets = [0, 0, 0], sizes = [1, 8, 32], strides = [1, 1, 1]} : vector<1x8x128xf32> to vector<1x8x32xf32>
    %13 = arith.truncf %12 : vector<1x8x32xf32> to vector<1x8x32xbf16>
    %14 = vector.extract_strided_slice %5 {offsets = [0, 0, 0], sizes = [1, 8, 32], strides = [1, 1, 1]} : vector<1x8x128xf32> to vector<1x8x32xf32>
    %15 = arith.truncf %14 : vector<1x8x32xf32> to vector<1x8x32xbf16>
    "tpu.trace_start"() <{level = 10 : i32, message = "bqd,bkd->bqk"}> : () -> ()
    %cst_4 = arith.constant dense<0.000000e+00> : vector<1x8x8xf32>
    %16 = tpu.matmul %11, %13, %cst_4 {dimension_numbers = #tpu.dot_dimension_numbers<[2], [2], [1], [1], [0, 0, 0, 1, 1, 1], [0], [0]>} : vector<1x8x32xbf16>, vector<1x8x32xbf16>, vector<1x8x8xf32> -> vector<1x8x8xf32>
    "tpu.trace_stop"() : () -> ()
    %cst_5 = arith.constant 0.176776692 : f32
    %17 = vector.broadcast %cst_5 : f32 to vector<1x8x8xf32>
    %18 = arith.mulf %16, %17 : vector<1x8x8xf32>
    %cst_6 = arith.constant -1.000000e+30 : f32
    %19 = vector.broadcast %cst_6 : f32 to vector<1x8x8xf32>
    %20 = arith.select %9, %18, %19 : vector<1x8x8xi1>, vector<1x8x8xf32>
    %cst_7 = arith.constant dense<0xFF800000> : vector<1x8xf32>
    %21 = vector.multi_reduction <maximumf>, %20, %cst_7 [2] : vector<1x8x8xf32> to vector<1x8xf32>
    %22 = vector.shape_cast %21 : vector<1x8xf32> to vector<1x8x1xf32>
    %23 = vector.broadcast %22 : vector<1x8x1xf32> to vector<1x8x8xf32>
    %24 = arith.subf %20, %23 : vector<1x8x8xf32>
    %25 = math.exp %24 : vector<1x8x8xf32>
    %cst_8 = arith.constant dense<0.000000e+00> : vector<1x8xf32>
    %26 = vector.multi_reduction <add>, %25, %cst_8 [2] : vector<1x8x8xf32> to vector<1x8xf32>
    %27 = vector.shape_cast %26 : vector<1x8xf32> to vector<1x8x1xf32>
    %28 = tpu.reciprocal %27 {approx = true} : vector<1x8x1xf32> -> vector<1x8x1xf32>
    %29 = vector.broadcast %28 : vector<1x8x1xf32> to vector<1x8x8xf32>
    %30 = arith.mulf %25, %29 : vector<1x8x8xf32>
    %31 = arith.truncf %30 : vector<1x8x8xf32> to vector<1x8x8xbf16>
    "tpu.trace_start"() <{level = 10 : i32, message = "bqk,bkd->bqd"}> : () -> ()
    %cst_9 = arith.constant dense<0.000000e+00> : vector<1x8x32xf32>
    %32 = tpu.matmul %31, %15, %cst_9 {dimension_numbers = #tpu.dot_dimension_numbers<[2], [1], [1], [2], [0, 0, 0, 1, 1, 2], [0], [0]>} : vector<1x8x8xbf16>, vector<1x8x32xbf16>, vector<1x8x32xf32> -> vector<1x8x32xf32>
    "tpu.trace_stop"() : () -> ()
    %33 = vector.extract_strided_slice %3 {offsets = [0, 0, 32], sizes = [1, 8, 32], strides = [1, 1, 1]} : vector<1x8x128xf32> to vector<1x8x32xf32>
    %34 = arith.truncf %33 : vector<1x8x32xf32> to vector<1x8x32xbf16>
    %35 = vector.extract_strided_slice %4 {offsets = [0, 0, 32], sizes = [1, 8, 32], strides = [1, 1, 1]} : vector<1x8x128xf32> to vector<1x8x32xf32>
    %36 = arith.truncf %35 : vector<1x8x32xf32> to vector<1x8x32xbf16>
    %37 = vector.extract_strided_slice %5 {offsets = [0, 0, 32], sizes = [1, 8, 32], strides = [1, 1, 1]} : vector<1x8x128xf32> to vector<1x8x32xf32>
    %38 = arith.truncf %37 : vector<1x8x32xf32> to vector<1x8x32xbf16>
    "tpu.trace_start"() <{level = 10 : i32, message = "bqd,bkd->bqk"}> : () -> ()
    %cst_10 = arith.constant dense<0.000000e+00> : vector<1x8x8xf32>
    %39 = tpu.matmul %34, %36, %cst_10 {dimension_numbers = #tpu.dot_dimension_numbers<[2], [2], [1], [1], [0, 0, 0, 1, 1, 1], [0], [0]>} : vector<1x8x32xbf16>, vector<1x8x32xbf16>, vector<1x8x8xf32> -> vector<1x8x8xf32>
    "tpu.trace_stop"() : () -> ()
    %cst_11 = arith.constant 0.176776692 : f32
    %40 = vector.broadcast %cst_11 : f32 to vector<1x8x8xf32>
    %41 = arith.mulf %39, %40 : vector<1x8x8xf32>
    %cst_12 = arith.constant -1.000000e+30 : f32
    %42 = vector.broadcast %cst_12 : f32 to vector<1x8x8xf32>
    %43 = arith.select %9, %41, %42 : vector<1x8x8xi1>, vector<1x8x8xf32>
    %cst_13 = arith.constant dense<0xFF800000> : vector<1x8xf32>
    %44 = vector.multi_reduction <maximumf>, %43, %cst_13 [2] : vector<1x8x8xf32> to vector<1x8xf32>
    %45 = vector.shape_cast %44 : vector<1x8xf32> to vector<1x8x1xf32>
    %46 = vector.broadcast %45 : vector<1x8x1xf32> to vector<1x8x8xf32>
    %47 = arith.subf %43, %46 : vector<1x8x8xf32>
    %48 = math.exp %47 : vector<1x8x8xf32>
    %cst_14 = arith.constant dense<0.000000e+00> : vector<1x8xf32>
    %49 = vector.multi_reduction <add>, %48, %cst_14 [2] : vector<1x8x8xf32> to vector<1x8xf32>
    %50 = vector.shape_cast %49 : vector<1x8xf32> to vector<1x8x1xf32>
    %51 = tpu.reciprocal %50 {approx = true} : vector<1x8x1xf32> -> vector<1x8x1xf32>
    %52 = vector.broadcast %51 : vector<1x8x1xf32> to vector<1x8x8xf32>
    %53 = arith.mulf %48, %52 : vector<1x8x8xf32>
    %54 = arith.truncf %53 : vector<1x8x8xf32> to vector<1x8x8xbf16>
    "tpu.trace_start"() <{level = 10 : i32, message = "bqk,bkd->bqd"}> : () -> ()
    %cst_15 = arith.constant dense<0.000000e+00> : vector<1x8x32xf32>
    %55 = tpu.matmul %54, %38, %cst_15 {dimension_numbers = #tpu.dot_dimension_numbers<[2], [1], [1], [2], [0, 0, 0, 1, 1, 2], [0], [0]>} : vector<1x8x8xbf16>, vector<1x8x32xbf16>, vector<1x8x32xf32> -> vector<1x8x32xf32>
    "tpu.trace_stop"() : () -> ()
    %56 = vector.extract_strided_slice %3 {offsets = [0, 0, 64], sizes = [1, 8, 32], strides = [1, 1, 1]} : vector<1x8x128xf32> to vector<1x8x32xf32>
    %57 = arith.truncf %56 : vector<1x8x32xf32> to vector<1x8x32xbf16>
    %58 = vector.extract_strided_slice %4 {offsets = [0, 0, 64], sizes = [1, 8, 32], strides = [1, 1, 1]} : vector<1x8x128xf32> to vector<1x8x32xf32>
    %59 = arith.truncf %58 : vector<1x8x32xf32> to vector<1x8x32xbf16>
    %60 = vector.extract_strided_slice %5 {offsets = [0, 0, 64], sizes = [1, 8, 32], strides = [1, 1, 1]} : vector<1x8x128xf32> to vector<1x8x32xf32>
    %61 = arith.truncf %60 : vector<1x8x32xf32> to vector<1x8x32xbf16>
    "tpu.trace_start"() <{level = 10 : i32, message = "bqd,bkd->bqk"}> : () -> ()
    %cst_16 = arith.constant dense<0.000000e+00> : vector<1x8x8xf32>
    %62 = tpu.matmul %57, %59, %cst_16 {dimension_numbers = #tpu.dot_dimension_numbers<[2], [2], [1], [1], [0, 0, 0, 1, 1, 1], [0], [0]>} : vector<1x8x32xbf16>, vector<1x8x32xbf16>, vector<1x8x8xf32> -> vector<1x8x8xf32>
    "tpu.trace_stop"() : () -> ()
    %cst_17 = arith.constant 0.176776692 : f32
    %63 = vector.broadcast %cst_17 : f32 to vector<1x8x8xf32>
    %64 = arith.mulf %62, %63 : vector<1x8x8xf32>
    %cst_18 = arith.constant -1.000000e+30 : f32
    %65 = vector.broadcast %cst_18 : f32 to vector<1x8x8xf32>
    %66 = arith.select %9, %64, %65 : vector<1x8x8xi1>, vector<1x8x8xf32>
    %cst_19 = arith.constant dense<0xFF800000> : vector<1x8xf32>
    %67 = vector.multi_reduction <maximumf>, %66, %cst_19 [2] : vector<1x8x8xf32> to vector<1x8xf32>
    %68 = vector.shape_cast %67 : vector<1x8xf32> to vector<1x8x1xf32>
    %69 = vector.broadcast %68 : vector<1x8x1xf32> to vector<1x8x8xf32>
    %70 = arith.subf %66, %69 : vector<1x8x8xf32>
    %71 = math.exp %70 : vector<1x8x8xf32>
    %cst_20 = arith.constant dense<0.000000e+00> : vector<1x8xf32>
    %72 = vector.multi_reduction <add>, %71, %cst_20 [2] : vector<1x8x8xf32> to vector<1x8xf32>
    %73 = vector.shape_cast %72 : vector<1x8xf32> to vector<1x8x1xf32>
    %74 = tpu.reciprocal %73 {approx = true} : vector<1x8x1xf32> -> vector<1x8x1xf32>
    %75 = vector.broadcast %74 : vector<1x8x1xf32> to vector<1x8x8xf32>
    %76 = arith.mulf %71, %75 : vector<1x8x8xf32>
    %77 = arith.truncf %76 : vector<1x8x8xf32> to vector<1x8x8xbf16>
    "tpu.trace_start"() <{level = 10 : i32, message = "bqk,bkd->bqd"}> : () -> ()
    %cst_21 = arith.constant dense<0.000000e+00> : vector<1x8x32xf32>
    %78 = tpu.matmul %77, %61, %cst_21 {dimension_numbers = #tpu.dot_dimension_numbers<[2], [1], [1], [2], [0, 0, 0, 1, 1, 2], [0], [0]>} : vector<1x8x8xbf16>, vector<1x8x32xbf16>, vector<1x8x32xf32> -> vector<1x8x32xf32>
    "tpu.trace_stop"() : () -> ()
    %79 = vector.extract_strided_slice %3 {offsets = [0, 0, 96], sizes = [1, 8, 32], strides = [1, 1, 1]} : vector<1x8x128xf32> to vector<1x8x32xf32>
    %80 = arith.truncf %79 : vector<1x8x32xf32> to vector<1x8x32xbf16>
    %81 = vector.extract_strided_slice %4 {offsets = [0, 0, 96], sizes = [1, 8, 32], strides = [1, 1, 1]} : vector<1x8x128xf32> to vector<1x8x32xf32>
    %82 = arith.truncf %81 : vector<1x8x32xf32> to vector<1x8x32xbf16>
    %83 = vector.extract_strided_slice %5 {offsets = [0, 0, 96], sizes = [1, 8, 32], strides = [1, 1, 1]} : vector<1x8x128xf32> to vector<1x8x32xf32>
    %84 = arith.truncf %83 : vector<1x8x32xf32> to vector<1x8x32xbf16>
    "tpu.trace_start"() <{level = 10 : i32, message = "bqd,bkd->bqk"}> : () -> ()
    %cst_22 = arith.constant dense<0.000000e+00> : vector<1x8x8xf32>
    %85 = tpu.matmul %80, %82, %cst_22 {dimension_numbers = #tpu.dot_dimension_numbers<[2], [2], [1], [1], [0, 0, 0, 1, 1, 1], [0], [0]>} : vector<1x8x32xbf16>, vector<1x8x32xbf16>, vector<1x8x8xf32> -> vector<1x8x8xf32>
    "tpu.trace_stop"() : () -> ()
    %cst_23 = arith.constant 0.176776692 : f32
    %86 = vector.broadcast %cst_23 : f32 to vector<1x8x8xf32>
    %87 = arith.mulf %85, %86 : vector<1x8x8xf32>
    %cst_24 = arith.constant -1.000000e+30 : f32
    %88 = vector.broadcast %cst_24 : f32 to vector<1x8x8xf32>
    %89 = arith.select %9, %87, %88 : vector<1x8x8xi1>, vector<1x8x8xf32>
    %cst_25 = arith.constant dense<0xFF800000> : vector<1x8xf32>
    %90 = vector.multi_reduction <maximumf>, %89, %cst_25 [2] : vector<1x8x8xf32> to vector<1x8xf32>
    %91 = vector.shape_cast %90 : vector<1x8xf32> to vector<1x8x1xf32>
    %92 = vector.broadcast %91 : vector<1x8x1xf32> to vector<1x8x8xf32>
    %93 = arith.subf %89, %92 : vector<1x8x8xf32>
    %94 = math.exp %93 : vector<1x8x8xf32>
    %cst_26 = arith.constant dense<0.000000e+00> : vector<1x8xf32>
    %95 = vector.multi_reduction <add>, %94, %cst_26 [2] : vector<1x8x8xf32> to vector<1x8xf32>
    %96 = vector.shape_cast %95 : vector<1x8xf32> to vector<1x8x1xf32>
    %97 = tpu.reciprocal %96 {approx = true} : vector<1x8x1xf32> -> vector<1x8x1xf32>
    %98 = vector.broadcast %97 : vector<1x8x1xf32> to vector<1x8x8xf32>
    %99 = arith.mulf %94, %98 : vector<1x8x8xf32>
    %100 = arith.truncf %99 : vector<1x8x8xf32> to vector<1x8x8xbf16>
    "tpu.trace_start"() <{level = 10 : i32, message = "bqk,bkd->bqd"}> : () -> ()
    %cst_27 = arith.constant dense<0.000000e+00> : vector<1x8x32xf32>
    %101 = tpu.matmul %100, %84, %cst_27 {dimension_numbers = #tpu.dot_dimension_numbers<[2], [1], [1], [2], [0, 0, 0, 1, 1, 2], [0], [0]>} : vector<1x8x8xbf16>, vector<1x8x32xbf16>, vector<1x8x32xf32> -> vector<1x8x32xf32>
    "tpu.trace_stop"() : () -> ()
    %102 = tpu.concatenate %32, %55, %78, %101 in 2 : vector<1x8x32xf32>, vector<1x8x32xf32>, vector<1x8x32xf32>, vector<1x8x32xf32> -> vector<1x8x128xf32>
    %103 = arith.truncf %102 : vector<1x8x128xf32> to vector<1x8x128xbf16>
    %c0_28 = arith.constant 0 : index
    %c0_29 = arith.constant 0 : index
    %104 = vector.load %arg3[%c0_28, %c0_29] : memref<128x128xbf16, #tpu.memory_space<vmem>>, vector<128x128xbf16>
    "tpu.trace_start"() <{level = 10 : i32, message = "btk,kn->btn"}> : () -> ()
    %cst_30 = arith.constant dense<0.000000e+00> : vector<1x8x128xf32>
    %105 = tpu.matmul %103, %104, %cst_30 {dimension_numbers = #tpu.dot_dimension_numbers<[2], [0], [0, 1], [1], [0, 0, 0, 1, 1, 1], [], []>} : vector<1x8x128xbf16>, vector<128x128xbf16>, vector<1x8x128xf32> -> vector<1x8x128xf32>
    "tpu.trace_stop"() : () -> ()
    %c0_31 = arith.constant 0 : index
    %c0_32 = arith.constant 0 : index
    %106 = vector.load %arg4[%c0_31, %c0_32] : memref<1x128xf32, #tpu.memory_space<vmem>>, vector<1x128xf32>
    %107 = vector.shape_cast %106 : vector<1x128xf32> to vector<1x1x128xf32>
    %108 = vector.broadcast %107 : vector<1x1x128xf32> to vector<1x8x128xf32>
    %109 = arith.addf %105, %108 : vector<1x8x128xf32>
    %110 = arith.extf %0 : vector<1x8x128xbf16> to vector<1x8x128xf32>
    %111 = arith.addf %109, %110 : vector<1x8x128xf32>
    %c0_33 = arith.constant 0 : index
    %c0_34 = arith.constant 0 : index
    %112 = vector.load %arg5[%c0_33, %c0_34] : memref<1x128xf32, #tpu.memory_space<vmem>>, vector<1x128xf32>
    %c0_35 = arith.constant 0 : index
    %c0_36 = arith.constant 0 : index
    %113 = vector.load %arg6[%c0_35, %c0_36] : memref<1x128xf32, #tpu.memory_space<vmem>>, vector<1x128xf32>
    %cst_37 = arith.constant dense<0.000000e+00> : vector<1x8xf32>
    %114 = vector.multi_reduction <add>, %111, %cst_37 [2] : vector<1x8x128xf32> to vector<1x8xf32>
    %115 = vector.shape_cast %114 : vector<1x8xf32> to vector<1x8x1xf32>
    %cst_38 = arith.constant 1.280000e+02 : f32
    %116 = vector.broadcast %cst_38 : f32 to vector<1x8x1xf32>
    %117 = arith.divf %115, %116 : vector<1x8x1xf32>
    %118 = vector.broadcast %117 : vector<1x8x1xf32> to vector<1x8x128xf32>
    %119 = arith.subf %111, %118 : vector<1x8x128xf32>
    %120 = arith.mulf %119, %119 : vector<1x8x128xf32>
    %cst_39 = arith.constant dense<0.000000e+00> : vector<1x8xf32>
    %121 = vector.multi_reduction <add>, %120, %cst_39 [2] : vector<1x8x128xf32> to vector<1x8xf32>
    %122 = vector.shape_cast %121 : vector<1x8xf32> to vector<1x8x1xf32>
    %cst_40 = arith.constant 1.280000e+02 : f32
    %123 = vector.broadcast %cst_40 : f32 to vector<1x8x1xf32>
    %124 = arith.divf %122, %123 : vector<1x8x1xf32>
    %125 = vector.broadcast %117 : vector<1x8x1xf32> to vector<1x8x128xf32>
    %126 = arith.subf %111, %125 : vector<1x8x128xf32>
    %cst_41 = arith.constant 9.99999974E-6 : f32
    %127 = vector.broadcast %cst_41 : f32 to vector<1x8x1xf32>
    %128 = arith.addf %124, %127 : vector<1x8x1xf32>
    %129 = math.rsqrt %128 : vector<1x8x1xf32>
    %130 = vector.broadcast %129 : vector<1x8x1xf32> to vector<1x8x128xf32>
    %131 = arith.mulf %126, %130 : vector<1x8x128xf32>
    %132 = vector.shape_cast %112 : vector<1x128xf32> to vector<1x1x128xf32>
    %133 = vector.broadcast %132 : vector<1x1x128xf32> to vector<1x8x128xf32>
    %134 = arith.mulf %131, %133 : vector<1x8x128xf32>
    %135 = vector.shape_cast %113 : vector<1x128xf32> to vector<1x1x128xf32>
    %136 = vector.broadcast %135 : vector<1x1x128xf32> to vector<1x8x128xf32>
    %137 = arith.addf %134, %136 : vector<1x8x128xf32>
    %138 = arith.truncf %137 : vector<1x8x128xf32> to vector<1x8x128xbf16>
    %cst_42 = arith.constant 0.000000e+00 : f32
    %139 = vector.broadcast %cst_42 : f32 to vector<1x8x128xf32>
    %c0_43 = arith.constant 0 : index
    %c0_44 = arith.constant 0 : index
    %140 = vector.load %arg7[%c0_43, %c0_44] : memref<128x512xbf16, #tpu.memory_space<vmem>>, vector<128x256xbf16>
    "tpu.trace_start"() <{level = 10 : i32, message = "btk,kn->btn"}> : () -> ()
    %cst_45 = arith.constant dense<0.000000e+00> : vector<1x8x256xf32>
    %141 = tpu.matmul %138, %140, %cst_45 {dimension_numbers = #tpu.dot_dimension_numbers<[2], [0], [0, 1], [1], [0, 0, 0, 1, 1, 1], [], []>} : vector<1x8x128xbf16>, vector<128x256xbf16>, vector<1x8x256xf32> -> vector<1x8x256xf32>
    "tpu.trace_stop"() : () -> ()
    %c0_46 = arith.constant 0 : index
    %c0_47 = arith.constant 0 : index
    %142 = vector.load %arg8[%c0_46, %c0_47] : memref<1x512xf32, #tpu.memory_space<vmem>>, vector<1x256xf32>
    %143 = vector.shape_cast %142 : vector<1x256xf32> to vector<1x1x256xf32>
    %144 = vector.broadcast %143 : vector<1x1x256xf32> to vector<1x8x256xf32>
    %145 = arith.addf %141, %144 : vector<1x8x256xf32>
    %cst_48 = arith.constant 0.000000e+00 : f32
    %146 = vector.broadcast %cst_48 : f32 to vector<1x8x256xf32>
    %147 = arith.maximumf %145, %146 : vector<1x8x256xf32>
    %148 = arith.truncf %147 : vector<1x8x256xf32> to vector<1x8x256xbf16>
    %c0_49 = arith.constant 0 : index
    %c0_50 = arith.constant 0 : index
    %149 = vector.load %arg9[%c0_49, %c0_50] : memref<512x128xbf16, #tpu.memory_space<vmem>>, vector<256x128xbf16>
    "tpu.trace_start"() <{level = 10 : i32, message = "btn,nk->btk"}> : () -> ()
    %cst_51 = arith.constant dense<0.000000e+00> : vector<1x8x128xf32>
    %150 = tpu.matmul %148, %149, %cst_51 {dimension_numbers = #tpu.dot_dimension_numbers<[2], [0], [0, 1], [1], [0, 0, 0, 1, 1, 1], [], []>} : vector<1x8x256xbf16>, vector<256x128xbf16>, vector<1x8x128xf32> -> vector<1x8x128xf32>
    "tpu.trace_stop"() : () -> ()
    %151 = arith.addf %139, %150 : vector<1x8x128xf32>
    %c0_52 = arith.constant 0 : index
    %c256 = arith.constant 256 : index
    %152 = vector.load %arg7[%c0_52, %c256] : memref<128x512xbf16, #tpu.memory_space<vmem>>, vector<128x256xbf16>
    "tpu.trace_start"() <{level = 10 : i32, message = "btk,kn->btn"}> : () -> ()
    %cst_53 = arith.constant dense<0.000000e+00> : vector<1x8x256xf32>
    %153 = tpu.matmul %138, %152, %cst_53 {dimension_numbers = #tpu.dot_dimension_numbers<[2], [0], [0, 1], [1], [0, 0, 0, 1, 1, 1], [], []>} : vector<1x8x128xbf16>, vector<128x256xbf16>, vector<1x8x256xf32> -> vector<1x8x256xf32>
    "tpu.trace_stop"() : () -> ()
    %c0_54 = arith.constant 0 : index
    %c256_55 = arith.constant 256 : index
    %154 = vector.load %arg8[%c0_54, %c256_55] : memref<1x512xf32, #tpu.memory_space<vmem>>, vector<1x256xf32>
    %155 = vector.shape_cast %154 : vector<1x256xf32> to vector<1x1x256xf32>
    %156 = vector.broadcast %155 : vector<1x1x256xf32> to vector<1x8x256xf32>
    %157 = arith.addf %153, %156 : vector<1x8x256xf32>
    %cst_56 = arith.constant 0.000000e+00 : f32
    %158 = vector.broadcast %cst_56 : f32 to vector<1x8x256xf32>
    %159 = arith.maximumf %157, %158 : vector<1x8x256xf32>
    %160 = arith.truncf %159 : vector<1x8x256xf32> to vector<1x8x256xbf16>
    %c256_57 = arith.constant 256 : index
    %c0_58 = arith.constant 0 : index
    %161 = vector.load %arg9[%c256_57, %c0_58] : memref<512x128xbf16, #tpu.memory_space<vmem>>, vector<256x128xbf16>
    "tpu.trace_start"() <{level = 10 : i32, message = "btn,nk->btk"}> : () -> ()
    %cst_59 = arith.constant dense<0.000000e+00> : vector<1x8x128xf32>
    %162 = tpu.matmul %160, %161, %cst_59 {dimension_numbers = #tpu.dot_dimension_numbers<[2], [0], [0, 1], [1], [0, 0, 0, 1, 1, 1], [], []>} : vector<1x8x256xbf16>, vector<256x128xbf16>, vector<1x8x128xf32> -> vector<1x8x128xf32>
    "tpu.trace_stop"() : () -> ()
    %163 = arith.addf %151, %162 : vector<1x8x128xf32>
    %c0_60 = arith.constant 0 : index
    %c0_61 = arith.constant 0 : index
    %164 = vector.load %arg10[%c0_60, %c0_61] : memref<1x128xf32, #tpu.memory_space<vmem>>, vector<1x128xf32>
    %165 = vector.shape_cast %164 : vector<1x128xf32> to vector<1x1x128xf32>
    %166 = vector.broadcast %165 : vector<1x1x128xf32> to vector<1x8x128xf32>
    %167 = arith.addf %163, %166 : vector<1x8x128xf32>
    %168 = arith.addf %167, %137 : vector<1x8x128xf32>
    %c0_62 = arith.constant 0 : index
    %c0_63 = arith.constant 0 : index
    %169 = vector.load %arg11[%c0_62, %c0_63] : memref<1x128xf32, #tpu.memory_space<vmem>>, vector<1x128xf32>
    %c0_64 = arith.constant 0 : index
    %c0_65 = arith.constant 0 : index
    %170 = vector.load %arg12[%c0_64, %c0_65] : memref<1x128xf32, #tpu.memory_space<vmem>>, vector<1x128xf32>
    %cst_66 = arith.constant dense<0.000000e+00> : vector<1x8xf32>
    %171 = vector.multi_reduction <add>, %168, %cst_66 [2] : vector<1x8x128xf32> to vector<1x8xf32>
    %172 = vector.shape_cast %171 : vector<1x8xf32> to vector<1x8x1xf32>
    %cst_67 = arith.constant 1.280000e+02 : f32
    %173 = vector.broadcast %cst_67 : f32 to vector<1x8x1xf32>
    %174 = arith.divf %172, %173 : vector<1x8x1xf32>
    %175 = vector.broadcast %174 : vector<1x8x1xf32> to vector<1x8x128xf32>
    %176 = arith.subf %168, %175 : vector<1x8x128xf32>
    %177 = arith.mulf %176, %176 : vector<1x8x128xf32>
    %cst_68 = arith.constant dense<0.000000e+00> : vector<1x8xf32>
    %178 = vector.multi_reduction <add>, %177, %cst_68 [2] : vector<1x8x128xf32> to vector<1x8xf32>
    %179 = vector.shape_cast %178 : vector<1x8xf32> to vector<1x8x1xf32>
    %cst_69 = arith.constant 1.280000e+02 : f32
    %180 = vector.broadcast %cst_69 : f32 to vector<1x8x1xf32>
    %181 = arith.divf %179, %180 : vector<1x8x1xf32>
    %182 = vector.broadcast %174 : vector<1x8x1xf32> to vector<1x8x128xf32>
    %183 = arith.subf %168, %182 : vector<1x8x128xf32>
    %cst_70 = arith.constant 9.99999974E-6 : f32
    %184 = vector.broadcast %cst_70 : f32 to vector<1x8x1xf32>
    %185 = arith.addf %181, %184 : vector<1x8x1xf32>
    %186 = math.rsqrt %185 : vector<1x8x1xf32>
    %187 = vector.broadcast %186 : vector<1x8x1xf32> to vector<1x8x128xf32>
    %188 = arith.mulf %183, %187 : vector<1x8x128xf32>
    %189 = vector.shape_cast %169 : vector<1x128xf32> to vector<1x1x128xf32>
    %190 = vector.broadcast %189 : vector<1x1x128xf32> to vector<1x8x128xf32>
    %191 = arith.mulf %188, %190 : vector<1x8x128xf32>
    %192 = vector.shape_cast %170 : vector<1x128xf32> to vector<1x1x128xf32>
    %193 = vector.broadcast %192 : vector<1x1x128xf32> to vector<1x8x128xf32>
    %194 = arith.addf %191, %193 : vector<1x8x128xf32>
    %195 = arith.truncf %194 : vector<1x8x128xf32> to vector<1x8x128xbf16>
    %c0_71 = arith.constant 0 : index
    %c0_72 = arith.constant 0 : index
    %c0_73 = arith.constant 0 : index
    %196 = vector.load %arg13[%c0_71, %c0_72, %c0_73] : memref<1x8x128xbf16, #tpu.memory_space<vmem>>, vector<1x8x128xbf16>
    tpu.vector_store %arg13[%c0_71, %c0_72, %c0_73], %195 {strides = array<i32>} : memref<1x8x128xbf16, #tpu.memory_space<vmem>>, vector<1x8x128xbf16>,
    return
  }
  func.func @transform_0(%arg0: i32) -> (i32, i32, i32) {
    %c0_i32 = arith.constant 0 : i32
    %c0_i32_0 = arith.constant 0 : i32
    %c0_i32_1 = arith.constant 0 : i32
    return %arg0, %c0_i32, %c0_i32_0 : i32, i32, i32
  }
  func.func @transform_1(%arg0: i32) -> (i32, i32) {
    %c0_i32 = arith.constant 0 : i32
    %c0_i32_0 = arith.constant 0 : i32
    %c0_i32_1 = arith.constant 0 : i32
    return %c0_i32, %c0_i32_0 : i32, i32
  }
  func.func @transform_2(%arg0: i32) -> (i32, i32) {
    %c0_i32 = arith.constant 0 : i32
    %c0_i32_0 = arith.constant 0 : i32
    %c0_i32_1 = arith.constant 0 : i32
    return %c0_i32, %c0_i32_0 : i32, i32
  }
  func.func @transform_3(%arg0: i32) -> (i32, i32) {
    %c0_i32 = arith.constant 0 : i32
    %c0_i32_0 = arith.constant 0 : i32
    %c0_i32_1 = arith.constant 0 : i32
    return %c0_i32, %c0_i32_0 : i32, i32
  }
  func.func @transform_4(%arg0: i32) -> (i32, i32) {
    %c0_i32 = arith.constant 0 : i32
    %c0_i32_0 = arith.constant 0 : i32
    %c0_i32_1 = arith.constant 0 : i32
    return %c0_i32, %c0_i32_0 : i32, i32
  }
  func.func @transform_5(%arg0: i32) -> (i32, i32) {
    %c0_i32 = arith.constant 0 : i32
    %c0_i32_0 = arith.constant 0 : i32
    %c0_i32_1 = arith.constant 0 : i32
    return %c0_i32, %c0_i32_0 : i32, i32
  }
  func.func @transform_6(%arg0: i32) -> (i32, i32) {
    %c0_i32 = arith.constant 0 : i32
    %c0_i32_0 = arith.constant 0 : i32
    %c0_i32_1 = arith.constant 0 : i32
    return %c0_i32, %c0_i32_0 : i32, i32
  }
  func.func @transform_7(%arg0: i32) -> (i32, i32) {
    %c0_i32 = arith.constant 0 : i32
    %c0_i32_0 = arith.constant 0 : i32
    %c0_i32_1 = arith.constant 0 : i32
    return %c0_i32, %c0_i32_0 : i32, i32
  }
  func.func @transform_8(%arg0: i32) -> (i32, i32) {
    %c0_i32 = arith.constant 0 : i32
    %c0_i32_0 = arith.constant 0 : i32
    %c0_i32_1 = arith.constant 0 : i32
    return %c0_i32, %c0_i32_0 : i32, i32
  }
  func.func @transform_9(%arg0: i32) -> (i32, i32) {
    %c0_i32 = arith.constant 0 : i32
    %c0_i32_0 = arith.constant 0 : i32
    %c0_i32_1 = arith.constant 0 : i32
    return %c0_i32, %c0_i32_0 : i32, i32
  }
  func.func @transform_10(%arg0: i32) -> (i32, i32) {
    %c0_i32 = arith.constant 0 : i32
    %c0_i32_0 = arith.constant 0 : i32
    %c0_i32_1 = arith.constant 0 : i32
    return %c0_i32, %c0_i32_0 : i32, i32
  }
  func.func @transform_11(%arg0: i32) -> (i32, i32) {
    %c0_i32 = arith.constant 0 : i32
    %c0_i32_0 = arith.constant 0 : i32
    %c0_i32_1 = arith.constant 0 : i32
    return %c0_i32, %c0_i32_0 : i32, i32
  }
  func.func @transform_12(%arg0: i32) -> (i32, i32, i32) {
    %c0_i32 = arith.constant 0 : i32
    %c0_i32_0 = arith.constant 0 : i32
    %c0_i32_1 = arith.constant 0 : i32
    return %arg0, %c0_i32, %c0_i32_0 : i32, i32, i32
  }
}

module attributes {stable_mosaic.version = 11 : i64} {
  func.func @embed_kernel(%arg0: i32, %arg1: memref<2x8xi32, #tpu.memory_space<vmem>>, %arg2: memref<128x128xbf16, #tpu.memory_space<vmem>>, %arg3: memref<8x128xf32, #tpu.memory_space<vmem>>, %arg4: memref<2x8x128xbf16, #tpu.memory_space<vmem>>) attributes {dimension_semantics = [#tpu.dimension_semantics<arbitrary>], iteration_bounds = array<i64: 1>, scalar_prefetch = 0 : i64, scratch_operands = 0 : i64, tpu.core_type = #tpu.core_type<tc>, window_params = [{pipeline_mode = #tpu.pipeline_mode<synchronous>, transform_indices = @transform_0, window_bounds = array<i64: 2, 8>}, {pipeline_mode = #tpu.pipeline_mode<synchronous>, transform_indices = @transform_1, window_bounds = array<i64: 128, 128>}, {pipeline_mode = #tpu.pipeline_mode<synchronous>, transform_indices = @transform_2, window_bounds = array<i64: 8, 128>}, {pipeline_mode = #tpu.pipeline_mode<synchronous>, transform_indices = @transform_3, window_bounds = array<i64: 2, 8, 128>}]} {
    %c0 = arith.constant 0 : index
    %c0_0 = arith.constant 0 : index
    %0 = vector.load %arg1[%c0, %c0_0] : memref<2x8xi32, #tpu.memory_space<vmem>>, vector<2x8xi32>
    %1 = tpu.iota {dimensions = array<i32: 2>} : vector<2x8x128xi32>
    %2 = vector.shape_cast %0 : vector<2x8xi32> to vector<2x8x1xi32>
    %3 = vector.broadcast %2 : vector<2x8x1xi32> to vector<2x8x128xi32>
    %4 = arith.cmpi eq, %1, %3 : vector<2x8x128xi32>
    %5 = arith.extui %4 : vector<2x8x128xi1> to vector<2x8x128xi32>
    %6 = arith.sitofp %5 : vector<2x8x128xi32> to vector<2x8x128xf32>
    %7 = arith.truncf %6 : vector<2x8x128xf32> to vector<2x8x128xbf16>
    %c0_1 = arith.constant 0 : index
    %c0_2 = arith.constant 0 : index
    %8 = vector.load %arg2[%c0_1, %c0_2] : memref<128x128xbf16, #tpu.memory_space<vmem>>, vector<128x128xbf16>
    "tpu.trace_start"() <{level = 10 : i32, message = "btv,vk->btk"}> : () -> ()
    %cst = arith.constant dense<0.000000e+00> : vector<2x8x128xf32>
    %9 = tpu.matmul %7, %8, %cst {dimension_numbers = #tpu.dot_dimension_numbers<[2], [0], [0, 1], [1], [0, 0, 0, 1, 1, 1], [], []>} : vector<2x8x128xbf16>, vector<128x128xbf16>, vector<2x8x128xf32> -> vector<2x8x128xf32>
    "tpu.trace_stop"() : () -> ()
    %c0_3 = arith.constant 0 : index
    %c0_4 = arith.constant 0 : index
    %10 = vector.load %arg3[%c0_3, %c0_4] : memref<8x128xf32, #tpu.memory_space<vmem>>, vector<8x128xf32>
    %11 = vector.shape_cast %10 : vector<8x128xf32> to vector<1x8x128xf32>
    %12 = vector.broadcast %11 : vector<1x8x128xf32> to vector<2x8x128xf32>
    %13 = arith.addf %9, %12 : vector<2x8x128xf32>
    %14 = arith.truncf %13 : vector<2x8x128xf32> to vector<2x8x128xbf16>
    %c0_5 = arith.constant 0 : index
    %c0_6 = arith.constant 0 : index
    %c0_7 = arith.constant 0 : index
    %15 = vector.load %arg4[%c0_5, %c0_6, %c0_7] : memref<2x8x128xbf16, #tpu.memory_space<vmem>>, vector<2x8x128xbf16>
    tpu.vector_store %arg4[%c0_5, %c0_6, %c0_7], %14 {strides = array<i32>} : memref<2x8x128xbf16, #tpu.memory_space<vmem>>, vector<2x8x128xbf16>,
    return
  }
  func.func @transform_0(%arg0: i32) -> (i32, i32) {
    %c0_i32 = arith.constant 0 : i32
    %c0_i32_0 = arith.constant 0 : i32
    %c0_i32_1 = arith.constant 0 : i32
    return %c0_i32, %c0_i32_0 : i32, i32
  }
  func.func @transform_1(%arg0: i32) -> (i32, i32) {
    %c0_i32 = arith.constant 0 : i32
    %c0_i32_0 = arith.constant 0 : i32
    %c0_i32_1 = arith.constant 0 : i32
    return %c0_i32, %c0_i32_0 : i32, i32
  }
  func.func @transform_2(%arg0: i32) -> (i32, i32) {
    %c0_i32 = arith.constant 0 : i32
    %c0_i32_0 = arith.constant 0 : i32
    %c0_i32_1 = arith.constant 0 : i32
    return %c0_i32, %c0_i32_0 : i32, i32
  }
  func.func @transform_3(%arg0: i32) -> (i32, i32, i32) {
    %c0_i32 = arith.constant 0 : i32
    %c0_i32_0 = arith.constant 0 : i32
    %c0_i32_1 = arith.constant 0 : i32
    %c0_i32_2 = arith.constant 0 : i32
    return %c0_i32, %c0_i32_0, %c0_i32_1 : i32, i32, i32
  }
}

module attributes {stable_mosaic.version = 11 : i64} {
  func.func @head_kernel(%arg0: i32, %arg1: i32, %arg2: memref<1x8x128xbf16, #tpu.memory_space<vmem>>, %arg3: memref<1x128xf32, #tpu.memory_space<vmem>>, %arg4: memref<1x128xf32, #tpu.memory_space<vmem>>, %arg5: memref<128x128xbf16, #tpu.memory_space<vmem>>, %arg6: memref<1x128xf32, #tpu.memory_space<vmem>>, %arg7: memref<1x8x128xf32, #tpu.memory_space<vmem>>) attributes {dimension_semantics = [#tpu.dimension_semantics<parallel>, #tpu.dimension_semantics<parallel>], iteration_bounds = array<i64: 2, 1>, scalar_prefetch = 0 : i64, scratch_operands = 0 : i64, tpu.core_type = #tpu.core_type<tc>, window_params = [{transform_indices = @transform_0, window_bounds = array<i64: 1, 8, 128>}, {pipeline_mode = #tpu.pipeline_mode<synchronous>, transform_indices = @transform_1, window_bounds = array<i64: 1, 128>}, {pipeline_mode = #tpu.pipeline_mode<synchronous>, transform_indices = @transform_2, window_bounds = array<i64: 1, 128>}, {transform_indices = @transform_3, window_bounds = array<i64: 128, 128>}, {transform_indices = @transform_4, window_bounds = array<i64: 1, 128>}, {transform_indices = @transform_5, window_bounds = array<i64: 1, 8, 128>}]} {
    %c0 = arith.constant 0 : index
    %c0_0 = arith.constant 0 : index
    %c0_1 = arith.constant 0 : index
    %0 = vector.load %arg2[%c0, %c0_0, %c0_1] : memref<1x8x128xbf16, #tpu.memory_space<vmem>>, vector<1x8x128xbf16>
    %1 = arith.extf %0 : vector<1x8x128xbf16> to vector<1x8x128xf32>
    %c0_2 = arith.constant 0 : index
    %c0_3 = arith.constant 0 : index
    %2 = vector.load %arg3[%c0_2, %c0_3] : memref<1x128xf32, #tpu.memory_space<vmem>>, vector<1x128xf32>
    %c0_4 = arith.constant 0 : index
    %c0_5 = arith.constant 0 : index
    %3 = vector.load %arg4[%c0_4, %c0_5] : memref<1x128xf32, #tpu.memory_space<vmem>>, vector<1x128xf32>
    %cst = arith.constant dense<0.000000e+00> : vector<1x8xf32>
    %4 = vector.multi_reduction <add>, %1, %cst [2] : vector<1x8x128xf32> to vector<1x8xf32>
    %5 = vector.shape_cast %4 : vector<1x8xf32> to vector<1x8x1xf32>
    %cst_6 = arith.constant 1.280000e+02 : f32
    %6 = vector.broadcast %cst_6 : f32 to vector<1x8x1xf32>
    %7 = arith.divf %5, %6 : vector<1x8x1xf32>
    %8 = vector.broadcast %7 : vector<1x8x1xf32> to vector<1x8x128xf32>
    %9 = arith.subf %1, %8 : vector<1x8x128xf32>
    %10 = arith.mulf %9, %9 : vector<1x8x128xf32>
    %cst_7 = arith.constant dense<0.000000e+00> : vector<1x8xf32>
    %11 = vector.multi_reduction <add>, %10, %cst_7 [2] : vector<1x8x128xf32> to vector<1x8xf32>
    %12 = vector.shape_cast %11 : vector<1x8xf32> to vector<1x8x1xf32>
    %cst_8 = arith.constant 1.280000e+02 : f32
    %13 = vector.broadcast %cst_8 : f32 to vector<1x8x1xf32>
    %14 = arith.divf %12, %13 : vector<1x8x1xf32>
    %15 = vector.broadcast %7 : vector<1x8x1xf32> to vector<1x8x128xf32>
    %16 = arith.subf %1, %15 : vector<1x8x128xf32>
    %cst_9 = arith.constant 9.99999974E-6 : f32
    %17 = vector.broadcast %cst_9 : f32 to vector<1x8x1xf32>
    %18 = arith.addf %14, %17 : vector<1x8x1xf32>
    %19 = math.rsqrt %18 : vector<1x8x1xf32>
    %20 = vector.broadcast %19 : vector<1x8x1xf32> to vector<1x8x128xf32>
    %21 = arith.mulf %16, %20 : vector<1x8x128xf32>
    %22 = vector.shape_cast %2 : vector<1x128xf32> to vector<1x1x128xf32>
    %23 = vector.broadcast %22 : vector<1x1x128xf32> to vector<1x8x128xf32>
    %24 = arith.mulf %21, %23 : vector<1x8x128xf32>
    %25 = vector.shape_cast %3 : vector<1x128xf32> to vector<1x1x128xf32>
    %26 = vector.broadcast %25 : vector<1x1x128xf32> to vector<1x8x128xf32>
    %27 = arith.addf %24, %26 : vector<1x8x128xf32>
    %28 = arith.truncf %27 : vector<1x8x128xf32> to vector<1x8x128xbf16>
    %c0_10 = arith.constant 0 : index
    %c0_11 = arith.constant 0 : index
    %29 = vector.load %arg5[%c0_10, %c0_11] : memref<128x128xbf16, #tpu.memory_space<vmem>>, vector<128x128xbf16>
    "tpu.trace_start"() <{level = 10 : i32, message = "btk,kv->btv"}> : () -> ()
    %cst_12 = arith.constant dense<0.000000e+00> : vector<1x8x128xf32>
    %30 = tpu.matmul %28, %29, %cst_12 {dimension_numbers = #tpu.dot_dimension_numbers<[2], [0], [0, 1], [1], [0, 0, 0, 1, 1, 1], [], []>} : vector<1x8x128xbf16>, vector<128x128xbf16>, vector<1x8x128xf32> -> vector<1x8x128xf32>
    "tpu.trace_stop"() : () -> ()
    %c0_13 = arith.constant 0 : index
    %c0_14 = arith.constant 0 : index
    %31 = vector.load %arg6[%c0_13, %c0_14] : memref<1x128xf32, #tpu.memory_space<vmem>>, vector<1x128xf32>
    %32 = vector.shape_cast %31 : vector<1x128xf32> to vector<1x1x128xf32>
    %33 = vector.broadcast %32 : vector<1x1x128xf32> to vector<1x8x128xf32>
    %34 = arith.addf %30, %33 : vector<1x8x128xf32>
    %c0_15 = arith.constant 0 : index
    %c0_16 = arith.constant 0 : index
    %c0_17 = arith.constant 0 : index
    %35 = vector.load %arg7[%c0_15, %c0_16, %c0_17] : memref<1x8x128xf32, #tpu.memory_space<vmem>>, vector<1x8x128xf32>
    tpu.vector_store %arg7[%c0_15, %c0_16, %c0_17], %34 {strides = array<i32>} : memref<1x8x128xf32, #tpu.memory_space<vmem>>, vector<1x8x128xf32>,
    return
  }
  func.func @transform_0(%arg0: i32, %arg1: i32) -> (i32, i32, i32) {
    %c0_i32 = arith.constant 0 : i32
    %c0_i32_0 = arith.constant 0 : i32
    %c0_i32_1 = arith.constant 0 : i32
    return %arg0, %c0_i32, %c0_i32_0 : i32, i32, i32
  }
  func.func @transform_1(%arg0: i32, %arg1: i32) -> (i32, i32) {
    %c0_i32 = arith.constant 0 : i32
    %c0_i32_0 = arith.constant 0 : i32
    %c0_i32_1 = arith.constant 0 : i32
    return %c0_i32, %c0_i32_0 : i32, i32
  }
  func.func @transform_2(%arg0: i32, %arg1: i32) -> (i32, i32) {
    %c0_i32 = arith.constant 0 : i32
    %c0_i32_0 = arith.constant 0 : i32
    %c0_i32_1 = arith.constant 0 : i32
    return %c0_i32, %c0_i32_0 : i32, i32
  }
  func.func @transform_3(%arg0: i32, %arg1: i32) -> (i32, i32) {
    %c0_i32 = arith.constant 0 : i32
    %c0_i32_0 = arith.constant 0 : i32
    return %c0_i32, %arg1 : i32, i32
  }
  func.func @transform_4(%arg0: i32, %arg1: i32) -> (i32, i32) {
    %c0_i32 = arith.constant 0 : i32
    %c0_i32_0 = arith.constant 0 : i32
    return %c0_i32, %arg1 : i32, i32
  }
  func.func @transform_5(%arg0: i32, %arg1: i32) -> (i32, i32, i32) {
    %c0_i32 = arith.constant 0 : i32
    %c0_i32_0 = arith.constant 0 : i32
    return %arg0, %c0_i32, %arg1 : i32, i32, i32
  }
}

</mosaic_0001>

<bundles_post_ra>
// kernel: grt_transformer_forward.4
= control target key start
LH: loop header
LB: loop body
LE: loop exit
PB: predicated region body
PF: predicated region fallthrough
CT: control target
= control target key end

     0   :  { %v16_v0 = vlaneseq  ;;  %v219_v1 = vmov 0.0   ;;  %vm220_vm0 = vmmov 0   ;;  %v221_v19 = vmov 1.0|1.0   ;;  %s275_s0 = inlined_call_operand.vmem [shape: s32[2,8], index: 0, kind: input, shape index: {}]   ;;  %s276_s1 = inlined_call_operand.vmem [shape: bf16[128,128], index: 1, kind: input, shape index: {}]   ;;  %s277_s2 = inlined_call_operand.vmem [shape: f32[8,128], index: 2, kind: input, shape index: {}]   ;;  %s278_s3 = inlined_call_operand.vmem [shape: bf16[2,8,128], index: 3, kind: output, shape index: {}]  }
   0x1   :  { %188 = vmatprep.subr.bf16.mxu0 %v219_v1  ;;  %204 = vmatprep.mubr.msk.bf16.mxu0 %vm220_vm0, %v219_v1  ;;  %v211_v3 = vld [vmem:[%s276_s1] sm:$0xff]   ;;  %v212_v7 = vld [vmem:[%s276_s1 + $0x8] sm:$0xff]   ;;  %v213_v10 = vld [vmem:[%s276_s1 + $0x10] sm:$0xff]  }
   0x2   :  { %v19_v2 = vshrl.u32 %v16_v0, 7  ;;  %v15_v4 = vld [vmem:[%s275_s0] sm:$0x3]  ;;  %189 = vmatpush3.bf16.msra.mxu0 %v211_v3  ;;  %v214_v11 = vld [vmem:[%s276_s1 + $0x18] sm:$0xff]   ;;  %v216_v13 = vld [vmem:[%s276_s1 + $0x28] sm:$0xff]   ;;  %v17_v17 = vand.u32 127, %v16_v0 }
   0x3   :  { %190 = vmatprep.subr.bf16.mxu0 %v219_v1  ;;  %v215_v12 = vld [vmem:[%s276_s1 + $0x20] sm:$0xff]   ;;  %v217_v14 = vld [vmem:[%s276_s1 + $0x30] sm:$0xff]   ;;  %v218_v15 = vld [vmem:[%s276_s1 + $0x38] sm:$0xff]  }
   0x4   :  { %v20_v5 = vsub.s32 0, %v19_v2  ;;  %v27_v6 = vsub.s32 1, %v19_v2  ;;  %v56_v20 = vld [vmem:[%s277_s2] sm:$0xff] }
   0x6   :  { %v21_v8 = vrot.slane %v15_v4, %v20_v5  ;;  %v28_v9 = vrot.slane %v15_v4, %v27_v6  ;;  %191 = vmatpush3.bf16.msra.mxu0 %v212_v7 }
   0x7   :  { %192 = vmatprep.subr.bf16.mxu0 %v219_v1 }
   0x8   :  { %23 = vbcast.lane.b32.xlu0 %v21_v8, 256 }
   0xa   :  { %193 = vmatpush3.bf16.msra.mxu0 %v213_v10 }
   0xb   :  { %194 = vmatprep.subr.bf16.mxu0 %v219_v1 }
   0xc   :  { %30 = vbcast.lane.b32.xlu0 %v28_v9, 256 }
   0xe   :  { %195 = vmatpush3.bf16.msra.mxu0 %v214_v11 }
   0xf   :  { %196 = vmatprep.subr.bf16.mxu0 %v219_v1 }
  0x12   :  { %197 = vmatpush3.bf16.msra.mxu0 %v215_v12 }
  0x13   :  { %198 = vmatprep.subr.bf16.mxu0 %v219_v1 }
  0x16   :  { %199 = vmatpush3.bf16.msra.mxu0 %v216_v13 }
  0x17   :  { %200 = vmatprep.subr.bf16.mxu0 %v219_v1 }
  0x1a   :  { %201 = vmatpush3.bf16.msra.mxu0 %v217_v14 }
  0x1b   :  { %202 = vmatprep.subr.bf16.mxu0 %v219_v1 }
  0x1e   :  { %203 = vmatpush3.bf16.msra.mxu0 %v218_v15 }
  0x7a   :  { %v24_v16 = vpop.permute.xlu0 %23 }
  0x7b   :  { %vm32_vm1 = vcmp.eq.s32.totalorder %v17_v17, %v24_v16 }
  0x7e   :  { %v31_v18 = vpop.permute.xlu0 %30 }
  0x7f   :  { %vm33_vm2 = vcmp.eq.s32.totalorder %v17_v17, %v31_v18 }
  0x80   :  { %vm172_vm3 = vmpackc.low %vm33_vm2, %vm32_vm1 }
  0x81   :  { %205 = vmatmul.mubr.msk.bf16.vlgmr.msra.gmra.mrb[0].mxu0 %vm172_vm3, %v221_v19 }
 0x154   :  { %v145_v21 = vpop.f32.mrb[0].mxu0 }
 0x155   :  { %v206_v22 = vpop.f32.mrb[1].mxu0  ;;  %v146_v24 = vadd.f32 %v145_v21, %v56_v20 }
 0x156   :  { %v148_v23 = vpop.f32.mrb[2].mxu0 }
 0x157   :  { %v149_v25 = vadd.f32 %v148_v23, %v56_v20  ;;  %v207_v26 = vpop.f32.mrb[3].mxu0 }
 0x159   :  { %v177_v27 = vpack.c.bf16 %v149_v25, %v146_v24 }
 0x15b   :  { %178 = vst [vmem:[%s278_s3] sm:$0xff] %v177_v27  }

// kernel: grt_transformer_forward.7
= control target key start
LH: loop header
LB: loop body
LE: loop exit
PB: predicated region body
PF: predicated region fallthrough
CT: control target
= control target key end

     0   :  { %10 = vsyncpa [#allocation3], 0  ;;  %s897_s0 = inlined_call_operand.vmem [shape: bf16[2,8,128], index: 0, kind: input, shape index: {}]   ;;  %s898_s1 = inlined_call_operand.vmem [shape: f32[1,128], index: 1, kind: input, shape index: {}]   ;;  %s899_s2 = inlined_call_operand.vmem [shape: f32[1,128], index: 2, kind: input, shape index: {}]   ;;  %s900_s3 = inlined_call_operand.vmem [shape: bf16[128,128], index: 3, kind: input, shape index: {}]   ;;  %s901_s4 = inlined_call_operand.vmem [shape: f32[1,128], index: 4, kind: input, shape index: {}]   ;;  %s902_s5 = inlined_call_operand.hbm [shape: f32[2,8,128], index: 5, kind: output, shape index: {}]  }
   0x1   :  { %12 = vsyncpa [#allocation3 + $0x1], 0  ;;  %s752_s18 = smov 0   ;;  %s754_s19 = smov 0  }
   0x2   :  { %s756_s20 = smov 0   ;;  %s758_s21 = smov 0  }
   0x3   :  { %s760_s22 = smov 0   ;;  %s762_s23 = smov 0  }
   0x4 LB: > { %s519_s24 = sadd.s32 4294967295, %s717_s23   ;;  %s520_s25 = sadd.s32 4294967294, %s717_s23   ;;  %s717_s23 = sphi %s762_s23, %s18_s23   ;;  %s713_s22 = sphi %s760_s22, %s909_s22   ;;  %s709_s21 = sphi %s758_s21, %s908_s21   ;;  %s705_s20 = sphi %s756_s20, %s907_s20   ;;  %s701_s19 = sphi %s754_s19, %s906_s19   ;;  %s697_s18 = sphi %s752_s18, %s905_s18  }
   0x5   : > { %s30_s26 = sadd.s32 1, %s713_s22  ;;  %s159_s27 = sadd.s32 1, %s705_s20 }
   0x6   : > { %p32_p0 = scmp.ge.s32.totalorder %s30_s26, 2  ;;  %p169_p1 = scmp.ne.s32.totalorder %s705_s20, %s701_s19 }
   0x7   : > { %p170_p2 = scmp.eq.s32.totalorder %s519_s24, 1  ;;  %p175_p3 = scmp.ne.s32.totalorder %s701_s19, %s697_s18 }
   0x8   : > { %s911_s26 = smov (%p32_p0, %s30_s26), 0  ;;  %p176_p5 = scmp.eq.s32.totalorder %s520_s25, 1 }
   0x9   : > { %p792_p4 = por %p170_p2, %p169_p1  ;;  %s154_s29 = ssub.s32 %s713_s22, %s911_s26 }
   0xa   : > { %p525_p6 = scmp.ge.s32.totalorder %s717_s23, 1  ;;  %p157_p7 = scmp.eq.s32.totalorder %s154_s29, 0 }
   0xb   : > { %p799_p8 = por %p176_p5, %p175_p3  ;;  %p220_p9 = scmp.lt.s32.totalorder %s717_s23, 3 }
   0xc   : > { %s805_s6 = scalar_select %p157_p7, %s705_s20, %s159_s27  }
   0xd   : > { %p221_p10 = pnand %p525_p6, %p220_p9 }
   0xe   : > { %p254_p11 = scmp.lt.s32.totalorder (!%p221_p10), %s709_s21, 1  ;;  %v629_v2 = vld [vmem:[%s900_s3] sm:$0xff] (!%p221_p10)   ;;  %v719_v3 = vmov (!%p221_p10), 0.0   ;;  %v630_v4 = vld [vmem:[%s900_s3 + $0x8] sm:$0xff] (!%p221_p10)   ;;  %v631_v9 = vld [vmem:[%s900_s3 + $0x10] sm:$0xff] (!%p221_p10)   ;;  %vm720_vm0 = vmmov (!%p221_p10), 0  }
   0xf   : > { %224 = sbr.rel (%p221_p10) target bundleno = 570 (0x23a), region = 40  ;;  %552 = vmatprep.subr.bf16.mxu0 (!%p221_p10), %v719_v3  ;;  %v632_v10 = vld [vmem:[%s900_s3 + $0x18] sm:$0xff] (!%p221_p10)   ;;  %v633_v11 = vld [vmem:[%s900_s3 + $0x20] sm:$0xff] (!%p221_p10)   ;;  %568 = vmatprep.mubr.msk.bf16.mxu0 (!%p221_p10), %vm720_vm0, %v719_v3  ;;  %v634_v12 = vld [vmem:[%s900_s3 + $0x28] sm:$0xff] (!%p221_p10)   ;;  %s251_s17 = sand.u32 (!%p221_p10), 1, %s701_s19  }
  0x10   : > { %553 = vmatpush3.bf16.msra.mxu0 (!%p221_p10), %v629_v2  ;;  %v635_v13 = vld [vmem:[%s900_s3 + $0x30] sm:$0xff] (!%p221_p10)   ;;  %v636_v14 = vld [vmem:[%s900_s3 + $0x38] sm:$0xff] (!%p221_p10)   ;;  %v528_v19 = vld [vmem:[%s898_s1] ss:$0 sm:$0xff] (!%p221_p10)  ;;  %s526_s24 = sshll.u32 (!%p221_p10), %s251_s17, 3  ;;  %s540_s29 = sshll.u32 (!%p221_p10), %s709_s21, 7 }
  0x11   : > { %554 = vmatprep.subr.bf16.mxu0 (!%p221_p10), %v719_v3  ;;  %v529_v21 = vld [vmem:[%s899_s2] ss:$0 sm:$0xff] (!%p221_p10)  ;;  %s410_s12 = scalar_lea.sflag (!%p221_p10), [#allocation3], %s251_s17  ;;  %s721_s13 = smov (!%p221_p10), [#allocation2]  }
  0x12   : > { %v530_v25 = vld [vmem:[%s901_s4] ss:$0 sm:$0xff] (!%p221_p10)  ;;  %s643_s14 = sshll.u32 (!%p221_p10), %s721_s13, 4  ;;  %s644_s14 = int_to_ptr.vmem [resolvable:$false] %s643_s14 }
  0x13   : > { %s645_s15 = scalar_lea.vmem (!%p221_p10), %s644_s14, 256 }
  0x14   : > { %555 = vmatpush3.bf16.msra.mxu0 (!%p221_p10), %v630_v4 }
  0x15   : > { %556 = vmatprep.subr.bf16.mxu0 (!%p221_p10), %v719_v3 }
  0x16   : > { %s255_s7 = scalar_select %p254_p11, %s709_s21, 1 }
  0x18   : > { %s527_s8 = sshll.u32 %s255_s7, 2  ;;  %557 = vmatpush3.bf16.msra.mxu0 %v631_v9  ;;  %s253_s7 = scalar_lea.vmem [#allocation2], %s526_s24 }
  0x19   : > { %s257_s11 = scalar_lea.vmem %s897_s0, %s527_s8  ;;  %558 = vmatprep.subr.bf16.mxu0 %v719_v3  ;;  %s424_s8 = sshll.u32 %s253_s7, 4  ;;  %s852_s8 = int_to_ptr.vmem [resolvable:$true] %s424_s8 }
  0x1a   : > { %v266_v0 = vld [vmem:[%s257_s11] sm:$0xf]  ;;  %s850_s11 = scalar_lea.hbm %s902_s5, %s540_s29  ;;  %s639_s21 = scalar_lea.vmem %s852_s8, 128 }
  0x1b   : > { %v267_v1 = vunpack.c.l.bf16 %v266_v0  ;;  %p640_p12 = scmp.ne.s32.totalorder %s852_s8, %s639_s21  ;;  %p646_p1 = scmp.lt.s32.totalorder %s852_s8, %s644_s14 }
  0x1c   : > { %559 = vmatpush3.bf16.msra.mxu0 %v632_v10  ;;  %p647_p2 = scmp.lt.s32.totalorder %s645_s15, %s639_s21 }
  0x1d   : > { %270 = vadd.xlane.f32.xlu0 %v267_v1  ;;  %560 = vmatprep.subr.bf16.mxu0 %v719_v3  ;;  %p641_p13 = pnand %p640_p12, %p792_p4 }
  0x1e   : > { %p648_p3 = por %p647_p2, %p646_p1 }
  0x1f   : > { %p642_p0 = pneg %p641_p13 }
  0x20   : > { %561 = vmatpush3.bf16.msra.mxu0 %v633_v11 }
  0x21   : > { %562 = vmatprep.subr.bf16.mxu0 %v719_v3  ;;  %p649_p5 = pnand %p648_p3, %p642_p0 }
  0x24   : > { %563 = vmatpush3.bf16.msra.mxu0 %v634_v12 }
  0x25   : > { %564 = vmatprep.subr.bf16.mxu0 %v719_v3 }
  0x28   : > { %565 = vmatpush3.bf16.msra.mxu0 %v635_v13 }
  0x29   : > { %566 = vmatprep.subr.bf16.mxu0 %v719_v3 }
  0x2c   : > { %567 = vmatpush3.bf16.msra.mxu0 %v636_v14 }
  0xaa   : > { %v271_v5 = vpop.xlane.xlu0 %270 }
  0xab   : > { %v273_v6 = vmul.f32 0.0078125, %v271_v5 }
  0xad   : > { %v274_v7 = vsub.f32 %v267_v1, %v273_v6 }
  0xaf   : > { %v275_v8 = vmul.f32 %v274_v7, %v274_v7 }
  0xb1   : > { %276 = vadd.xlane.f32.xlu0 %v275_v8 }
 0x13e   : > { %v277_v15 = vpop.xlane.xlu0 %276 }
 0x13f   : > { %v278_v16 = vmul.f32 0.0078125, %v277_v15 }
 0x141   : > { %v279_v17 = vadd.f32 1e-05, %v278_v16 }
 0x143   : > { %637 = vrsqrt.f32 %v279_v17 }
 0x14d   : > { %v638_v18 = vpop.eup %637 }
 0x14e   : > { %v281_v20 = vmul.f32 %v638_v18, %v274_v7 }
 0x150   : > { %v288_v22 = vmul.f32 %v528_v19, %v281_v20 }
 0x152   : > { %v295_v23 = vadd.f32 %v529_v21, %v288_v22 }
 0x154   : > { %v296_v24 = vpack.c.bf16 %v295_v23, %v295_v23 }
 0x156   : > { %569 = vmatmul.mubr.bf16.vlgmr.msra.gmra.mrb[0].mxu0 %v296_v24 }
 0x229   : > { %v402_v26 = vpop.f32.mrb[0].mxu0 }
 0x22a   : > { %v403_v27 = vadd.f32 %v530_v25, %v402_v26  ;;  %v570_v28 = vpop.f32.mrb[1].mxu0 }
 0x22b   : > { %v405_v29 = vpop.f32.mrb[2].mxu0 }
 0x22c   : > { %408 = vst [vmem:[%s253_s7] sm:$0xff] %v403_v27  ;;  %v571_v30 = vpop.f32.mrb[3].mxu0 }
 0x22d   : > { %652 = shalt.err (!%p649_p5)
}
 0x22e   : > { %s653_s16 = scalar_lea.hbm %s850_s11, 128  ;;  %s657_s25 = scalar_lea.hbm %s902_s5, 256 }
 0x22f   : > { %p654_p6 = scmp.ne.s32.totalorder %s850_s11, %s653_s16  ;;  %p658_p10 = scmp.lt.u32.totalorder %s850_s11, %s902_s5 }
 0x230   : > { %p659_p11 = scmp.lt.u32.totalorder %s657_s25, %s653_s16  ;;  %p661_p13 = scmp.lt.u32.totalorder %s653_s16, %s850_s11 }
 0x231   : > { %p655_p7 = pnand %p654_p6, %p792_p4 }
 0x232   : > { %p660_p12 = por %p659_p11, %p658_p10 }
 0x233   : > { %p656_p9 = pneg %p655_p7 }
 0x234   : > { %p662_p0 = por %p661_p13, %p660_p12 }
 0x236   : > { %p663_p1 = pnand %p662_p0, %p656_p9 }
 0x238   : > { %666 = shalt.err (!%p663_p1)
}
 0x239   : > { %572 = dma.vmem_to_hbm [thread:$0]  (%p792_p4), %s852_s8, 128, %s850_s11, %s410_s12  }
 0x23a PF: > { %p578_p2 = scmp.ge.s32.totalorder %s717_s23, 2  ;;  %s436_s7 = sand.u32 1, %s697_s18  }
 0x23b   : > { %s437_s9 = scalar_lea.sflag [#allocation3], %s436_s7 }
 0x23c   : > { %p575_p3 = pnand %p578_p2, %p799_p8 }
 0x23e   : > { %692 = dma.done.wait (!%p575_p3), %s437_s9, 128  }
 0x23f   : > { %694 = vsyncadd (!%p575_p3), %s437_s9, 4294967168  ;;  %s18_s23 = sadd.s32 1, %s717_s23   ;;  %s905_s18 = smov %s701_s19 }
 0x240   : > { %p15_p5 = scmp.ge.s32.totalorder %s18_s23, 4   ;;  %s906_s19 = smov %s705_s20 }
 0x241   : > { %s907_s20 = smov %s805_s6  ;;  %s908_s21 = smov %s713_s22 }
 0x242   : > { %s909_s22 = smov %s911_s26  ;;  %17 = sbr.rel (!%p15_p5) target bundleno = 4 (0x4), region = 81 }
 0x249   :  { %442 = vsyncpa [#allocation3], 1 }
 0x24a   :  { %444 = vsyncpa [#allocation3 + $0x1], 1 }

// kernel: grt_transformer_forward.5
= control target key start
LH: loop header
LB: loop body
LE: loop exit
PB: predicated region body
PF: predicated region fallthrough
CT: control target
= control target key end

     0   :  { %s2519_s21 = smov 0   ;;  %s2978_s0 = inlined_call_operand.vmem [shape: bf16[2,8,128], index: 0, kind: input, shape index: {}, may-alias: {0,12}]   ;;  %s2979_s1 = inlined_call_operand.vmem [shape: bf16[128,384], index: 1, kind: input, shape index: {}]   ;;  %s2980_s2 = inlined_call_operand.vmem [shape: bf16[128,128], index: 2, kind: input, shape index: {}]   ;;  %s2981_s3 = inlined_call_operand.vmem [shape: f32[1,128], index: 3, kind: input, shape index: {}]   ;;  %s2982_s4 = inlined_call_operand.vmem [shape: f32[1,128], index: 4, kind: input, shape index: {}]   ;;  %s2983_s5 = inlined_call_operand.vmem [shape: f32[1,128], index: 5, kind: input, shape index: {}]   ;;  %s2984_s6 = inlined_call_operand.vmem [shape: bf16[128,512], index: 6, kind: input, shape index: {}]   ;;  %s2985_s7 = inlined_call_operand.vmem [shape: f32[1,512], index: 7, kind: input, shape index: {}]   ;;  %s2986_s8 = inlined_call_operand.vmem [shape: bf16[512,128], index: 8, kind: input, shape index: {}]   ;;  %s2987_s9 = inlined_call_operand.vmem [shape: f32[1,128], index: 9, kind: input, shape index: {}]   ;;  %s2988_s10 = inlined_call_operand.vmem [shape: f32[1,128], index: 10, kind: input, shape index: {}]   ;;  %s2989_s11 = inlined_call_operand.vmem [shape: f32[1,128], index: 11, kind: input, shape index: {}]   ;;  %s2990_s12 = inlined_call_operand.vmem [shape: bf16[2,8,128], index: 12, kind: output, shape index: {}, may-alias: {0,12}]  }
   0x1 LB: > { %s2001_s22 = sadd.s32 4294967295, %s2446_s21   ;;  %p2005_p0 = scmp.ge.s32.totalorder %s2446_s21, 1  ;;  %s2446_s21 = sphi %s2519_s21, %s22_s21  }
   0x2   : > { %p361_p1 = scmp.lt.s32.totalorder %s2446_s21, 3 }
   0x4   : > { %p362_p2 = pnand %p2005_p0, %p361_p1 }
   0x5   : > { %v2300_v0 = vld [vmem:[%s2979_s1 + $0x4] ss:$12 sps:$4 sm:$0xff] (!%p362_p2)   ;;  %v2302_v1 = vld [vmem:[%s2979_s1] ss:$12 sps:$4 sm:$0xff] (!%p362_p2)   ;;  %v2448_v2 = vmov (!%p362_p2), 0   ;;  %v2449_v4 = vmov (!%p362_p2), 0.0   ;;  %v652_v40 = vlaneseq (!%p362_p2) }
   0x6   : > { %365 = sbr.rel (%p362_p2) target bundleno = 2969 (0xb99), region = 68  ;;  %603 = vmatprep.mubr.bf16.mxu0 (!%p362_p2), %v2448_v2  ;;  %571 = vmatprep.subr.bf16.mxu0 (!%p362_p2), %v2300_v0  ;;  %v2303_v3 = vld [vmem:[%s2979_s1 + $0x1c] ss:$12 sps:$4 sm:$0xff] (!%p362_p2)   ;;  %v2305_v5 = vld [vmem:[%s2979_s1 + $0x18] ss:$12 sps:$4 sm:$0xff] (!%p362_p2)   ;;  %p401_p3 = scmp.lt.s32.totalorder (!%p362_p2), %s2001_s22, 1 }
   0x7   : > { %2198 = vmatprep.subr.bf16.mxu1 (!%p362_p2), %v2449_v4  ;;  %572 = vmatpush1.bf16.msra.mxu0 (!%p362_p2), %v2302_v1  ;;  %v2306_v6 = vld [vmem:[%s2979_s1 + $0x34] ss:$12 sps:$4 sm:$0xff] (!%p362_p2)   ;;  %v2308_v7 = vld [vmem:[%s2979_s1 + $0x30] ss:$12 sps:$4 sm:$0xff] (!%p362_p2)   ;;  %v2309_v8 = vld [vmem:[%s2979_s1 + $0x4c] ss:$12 sps:$4 sm:$0xff] (!%p362_p2)  }
   0x8   : > { %573 = vmatprep.subr.bf16.mxu0 (!%p362_p2), %v2303_v3  ;;  %v2311_v9 = vld [vmem:[%s2979_s1 + $0x48] ss:$12 sps:$4 sm:$0xff] (!%p362_p2)   ;;  %v2312_v11 = vld [vmem:[%s2979_s1 + $0x64] ss:$12 sps:$4 sm:$0xff] (!%p362_p2)   ;;  %v2325_v12 = vld [vmem:[%s2979_s1 + $0x20] ss:$12 sps:$4 sm:$0xff] (!%p362_p2)  }
   0x9   : > { %v2324_v10 = vld [vmem:[%s2979_s1 + $0x8] ss:$12 sps:$4 sm:$0xff] (!%p362_p2)   ;;  %v2314_v13 = vld [vmem:[%s2979_s1 + $0x60] ss:$12 sps:$4 sm:$0xff] (!%p362_p2)   ;;  %v2317_v15 = vld [vmem:[%s2979_s1 + $0x78] ss:$12 sps:$4 sm:$0xff] (!%p362_p2)  }
   0xa   : > { %2199 = vmatpush3.bf16.msra.mxu1 (!%p362_p2), %v2324_v10  ;;  %v2315_v14 = vld [vmem:[%s2979_s1 + $0x7c] ss:$12 sps:$4 sm:$0xff] (!%p362_p2)   ;;  %v2326_v16 = vld [vmem:[%s2979_s1 + $0x38] ss:$12 sps:$4 sm:$0xff] (!%p362_p2)   ;;  %v2318_v17 = vld [vmem:[%s2979_s1 + $0x94] ss:$12 sps:$4 sm:$0xff] (!%p362_p2)  }
   0xb   : > { %574 = vmatpush1.bf16.msra.mxu0 (!%p362_p2), %v2305_v5  ;;  %2200 = vmatprep.subr.bf16.mxu1 (!%p362_p2), %v2449_v4  ;;  %v2327_v18 = vld [vmem:[%s2979_s1 + $0x50] ss:$12 sps:$4 sm:$0xff] (!%p362_p2)   ;;  %v2321_v20 = vld [vmem:[%s2979_s1 + $0xac] ss:$12 sps:$4 sm:$0xff] (!%p362_p2)   ;;  %v2328_v21 = vld [vmem:[%s2979_s1 + $0x68] ss:$12 sps:$4 sm:$0xff] (!%p362_p2)  }
   0xc   : > { %575 = vmatprep.subr.bf16.mxu0 (!%p362_p2), %v2306_v6  ;;  %v2320_v19 = vld [vmem:[%s2979_s1 + $0x90] ss:$12 sps:$4 sm:$0xff] (!%p362_p2)   ;;  %v2323_v22 = vld [vmem:[%s2979_s1 + $0xa8] ss:$12 sps:$4 sm:$0xff] (!%p362_p2)   ;;  %v2329_v23 = vld [vmem:[%s2979_s1 + $0x80] ss:$12 sps:$4 sm:$0xff] (!%p362_p2)  }
   0xd   : > { %s2992_s22 = smov (!%p401_p3, %s2001_s22), 1  ;;  %v2330_v25 = vld [vmem:[%s2979_s1 + $0x98] ss:$12 sps:$4 sm:$0xff]   ;;  %v2331_v26 = vld [vmem:[%s2979_s1 + $0xb0] ss:$12 sps:$4 sm:$0xff]   ;;  %vm2450_vm0 = vmmov 0  }
   0xe   : > { %s2006_s29 = sshll.u32 %s2992_s22, 2  ;;  %2201 = vmatpush3.bf16.msra.mxu1 %v2325_v12  ;;  %2214 = vmatprep.mubr.msk.bf16.mxu1 %vm2450_vm0, %v2449_v4  ;;  %vm660_vm1 = vcmask 261120   ;;  %s2451_s28 = smov 96   ;;  %vm725_vm2 = vcmask 1043456   ;;  %v2643_v41 = vshrl.u32 %v652_v40, 7  ;;  %v2645_v42 = vand.u32 127, %v652_v40 }
   0xf   : > { %576 = vmatpush1.bf16.msra.mxu0 %v2308_v7  ;;  %2202 = vmatprep.subr.bf16.mxu1 %v2449_v4  ;;  %s404_s19 = scalar_lea.vmem %s2978_s0, %s2006_s29  ;;  %s2452_s30 = smov 64   ;;  %vm709_vm4 = vcmask 64512   ;;  %vm1121_vm5 = vcmask 523264   ;;  %vm1123_vm6 = vcmask 785408  }
  0x10   : > { %577 = vmatprep.subr.bf16.mxu0 %v2309_v8  ;;  %v2607_v24 = vld [vmem:[%s404_s19] sm:$0xf]  ;;  %s2453_s13 = smov 32   ;;  %vm656_vm3 = vcmp.le.s32.totalorder %v2645_v42, %v2643_v41  ;;  %s408_s14 = scalar_lea.vmem %s2990_s12, %s2006_s29 }
  0x12   : > { %2203 = vmatpush3.bf16.msra.mxu1 %v2326_v16 }
  0x13   : > { %578 = vmatpush1.bf16.msra.mxu0 %v2311_v9  ;;  %2204 = vmatprep.subr.bf16.mxu1 %v2449_v4 }
  0x14   : > { %579 = vmatprep.subr.bf16.mxu0 %v2312_v11 }
  0x16   : > { %2205 = vmatpush3.bf16.msra.mxu1 %v2327_v18 }
  0x17   : > { %580 = vmatpush1.bf16.msra.mxu0 %v2314_v13  ;;  %2206 = vmatprep.subr.bf16.mxu1 %v2449_v4 }
  0x18   : > { %581 = vmatprep.subr.bf16.mxu0 %v2315_v14 }
  0x1a   : > { %2207 = vmatpush3.bf16.msra.mxu1 %v2328_v21 }
  0x1b   : > { %582 = vmatpush1.bf16.msra.mxu0 %v2317_v15  ;;  %2208 = vmatprep.subr.bf16.mxu1 %v2449_v4 }
  0x1c   : > { %583 = vmatprep.subr.bf16.mxu0 %v2318_v17 }
  0x1e   : > { %2209 = vmatpush3.bf16.msra.mxu1 %v2329_v23 }
  0x1f   : > { %584 = vmatpush1.bf16.msra.mxu0 %v2320_v19  ;;  %2210 = vmatprep.subr.bf16.mxu1 %v2449_v4 }
  0x20   : > { %585 = vmatprep.subr.bf16.mxu0 %v2321_v20 }
  0x22   : > { %2211 = vmatpush3.bf16.msra.mxu1 %v2330_v25 }
  0x23   : > { %586 = vmatpush1.bf16.msra.mxu0 %v2323_v22  ;;  %2212 = vmatprep.subr.bf16.mxu1 %v2449_v4 }
  0x24   : > { %2242 = vmatprep.subr.bf16.mxu0 %v2449_v4 }
  0x26   : > { %604 = vmatmul.mubr.bf16.vlgmr.msra.gmra.mrb[0].mxu0 %v2607_v24  ;;  %2213 = vmatpush3.bf16.msra.mxu1 %v2331_v26 }
  0x27   : > { %2218 = vmatprep.subr.bf16.mxu1 %v2449_v4  ;;  %2244 = vmatprep.mubr.msk.bf16.mxu0 %vm2450_vm0, %v2449_v4 }
  0x29   : > { %2215 = vmatmul.mubr.bf16.vlgmr.msra.gmra.mrb[0].mxu1 %v2607_v24 }
  0x2a   : > { %2220 = vmatprep.mubr.msk.bf16.mxu1 %vm2450_vm0, %v2449_v4 }
  0xf9   : > { %v605_v27 = vpop.f32.mrb[0].mxu0 }
  0xfa   : > { %v607_v28 = vpop.f32.mrb[1].mxu0  ;;  %v657_v33 = vpack.c.bf16 %v605_v27, %v605_v27 }
  0xfb   : > { %v658_v29 = vpack.c.bf16 %v607_v28, %v607_v28  ;;  %v609_v30 = vpop.f32.mrb[2].mxu0 }
  0xfc   : > { %v610_v31 = vpop.f32.mrb[3].mxu0  ;;  %v646_v34 = vpop.f32.mrb[0].mxu1 }
  0xfd   : > { %773 = vrot.lane.b32.xlu1 %v658_v29, %s2451_s28  ;;  %v665_v32 = vsel %vm660_vm1, %v658_v29, 0  ;;  %v2638_v35 = vpack.c.bf16 %v646_v34, %v646_v34  ;;  %v2216_v36 = vpop.f32.mrb[1].mxu1 }
  0xfe   : > { %2219 = vmatpush3.bf16.xpose.msra.mxu1 %v665_v32  ;;  %v649_v37 = vpop.f32.mrb[2].mxu1 }
  0xff   : > { %2224 = vmatprep.subr.bf16.mxu1 %v2449_v4  ;;  %v2217_v38 = vpop.f32.mrb[3].mxu1  ;;  %v727_v39 = vsel %vm725_vm2, %v2638_v35, 0 }
 0x101   : > { %770 = vrot.lane.b32.xlu1 %v657_v33, %s2451_s28 }
 0x105   : > { %884 = vrot.lane.b32.xlu1 %v657_v33, %s2452_s30  ;;  %2221 = vmatmul.mubr.msk.bf16.vlgmr.msra.gmra.mrb[4].mxu1 %vm660_vm1, %v657_v33 }
 0x106   : > { %2226 = vmatprep.mubr.msk.bf16.mxu1 %vm2450_vm0, %v2449_v4  ;;  %2225 = vmatpush3.bf16.msra.mxu1 %v727_v39 }
 0x107   : > { %2230 = vmatprep.subr.bf16.mxu1 %v2449_v4 }
 0x109   : > { %998 = vrot.lane.b32.xlu1 %v658_v29, %s2453_s13 }
 0x10d   : > { %996 = vrot.lane.b32.xlu1 %v657_v33, %s2453_s13 }
 0x16f   : > { %v774_v55 = vpop.permute.xlu1 %773 }
 0x170   : > { %v779_v3 = vsel %vm660_vm1, %v774_v55, 0 }
 0x173   : > { %v771_v56 = vpop.permute.xlu1 %770 }
 0x177   : > { %v885_v58 = vpop.permute.xlu1 %884 }
 0x17b   : > { %v999_v61 = vpop.permute.xlu1 %998 }
 0x17c   : > { %v1004_v0 = vsel %vm660_vm1, %v999_v61, 0 }
 0x17f   : > { %v997_v5 = vpop.permute.xlu1 %996 }
 0x1d8   : > { %v701_v43 = vpop.f32.mrb[4].mxu1 }
 0x1d9   : > { %v707_v44 = vmul.f32 0.17677669, %v701_v43  ;;  %v2222_v45 = vpop.f32.mrb[5].mxu1 }
 0x1da   : > { %v704_v46 = vpop.f32.mrb[6].mxu1 }
 0x1db   : > { %v2223_v47 = vpop.f32.mrb[7].mxu1  ;;  %v708_v48 = vsel %vm656_vm3, %v707_v44, -1e+30 }
 0x1dc   : > { %v710_v49 = vsel %vm709_vm4, %v708_v48, -inf }
 0x1dd   : > { %711 = vmax.xlane.f32.xlu0 %v710_v49 }
 0x26a   : > { %v712_v50 = vpop.xlane.xlu0 %711 }
 0x26b   : > { %v713_v51 = vsub.f32 %v708_v48, %v712_v50 }
 0x26d   : > { %v714_v52 = vmul.f32 1.442695, %v713_v51 }
 0x26f   : > { %2420 = vpow2.f32 %v714_v52 }
 0x279   : > { %v2421_v53 = vpop.eup %2420 }
 0x27a   : > { %v716_v54 = vsel %vm709_vm4, %v2421_v53, 0.0 }
 0x27b   : > { %717 = vadd.xlane.f32.xlu0 %v716_v54 }
 0x291   : > { %886 = vrot.lane.b32.xlu0 %v658_v29, %s2452_s30 }
 0x308   : > { %v718_v57 = vpop.xlane.xlu0 %717 }
 0x309   : > { %2422 = vrcp.f32 %v718_v57 }
 0x30c   : > { %v887_v59 = vpop.permute.xlu0 %886 }
 0x30d   : > { %v892_v60 = vsel %vm660_vm1, %v887_v59, 0 }
 0x30e   : > { %2243 = vmatpush3.bf16.xpose.msra.mxu0 %v892_v60 }
 0x30f   : > { %2254 = vmatprep.subr.bf16.mxu0 %v2449_v4 }
 0x313   : > { %v2423_v62 = vpop.eup %2422 }
 0x314   : > { %v720_v63 = vmul.f32 %v2423_v62, %v2421_v53 }
 0x315   : > { %2245 = vmatmul.mubr.msk.bf16.vlgmr.msra.gmra.mrb[4].mxu0 %vm660_vm1, %v885_v58 }
 0x316   : > { %2255 = vmatpush3.bf16.xpose.msra.mxu0 %v1004_v0  ;;  %v721_v1 = vpack.c.bf16 %v720_v63, %v720_v63  ;;  %2256 = vmatprep.mubr.msk.bf16.mxu0 %vm2450_vm0, %v2449_v4 }
 0x317   : > { %2266 = vmatprep.subr.bf16.mxu0 %v2449_v4 }
 0x318   : > { %2227 = vmatmul.mubr.msk.bf16.vlgmr.msra.gmra.mrb[8].mxu1 %vm709_vm4, %v721_v1 }
 0x319   : > { %2231 = vmatpush3.bf16.xpose.msra.mxu1 %v779_v3  ;;  %2232 = vmatprep.mubr.msk.bf16.mxu1 %vm2450_vm0, %v2449_v4  ;;  %v2332_v3 = vld [vmem:[%s2980_s2] sm:$0xff]  }
 0x31a   : > { %2236 = vmatprep.subr.bf16.mxu1 %v2449_v4 }
 0x31d   : > { %2257 = vmatmul.mubr.msk.bf16.vlgmr.msra.gmra.mrb[8].mxu0 %vm660_vm1, %v997_v5  ;;  %v2333_v5 = vld [vmem:[%s2980_s2 + $0x8] sm:$0xff]  }
 0x31e   : > { %2282 = vmatprep.mubr.msk.bf16.mxu0 %vm2450_vm0, %v2449_v4  ;;  %2267 = vmatpush3.bf16.msra.mxu0 %v2332_v3  ;;  %v2378_v3 = vld [vmem:[%s2984_s6 + $0xc4] ss:$16 sps:$4 sm:$0xff]  }
 0x31f   : > { %2268 = vmatprep.subr.bf16.mxu0 %v2449_v4 }
 0x320   : > { %2233 = vmatmul.mubr.msk.bf16.vlgmr.msra.gmra.mrb[12].mxu1 %vm660_vm1, %v771_v56 }
 0x321   : > { %2238 = vmatprep.mubr.msk.bf16.mxu1 %vm2450_vm0, %v2449_v4 }
 0x322   : > { %2269 = vmatpush3.bf16.msra.mxu0 %v2333_v5  ;;  %v2381_v5 = vld [vmem:[%s2984_s6 + $0xcc] ss:$16 sps:$4 sm:$0xff]  }
 0x323   : > { %2270 = vmatprep.subr.bf16.mxu0 %v2449_v4 }
 0x3e8   : > { %v928_v6 = vpop.f32.mrb[4].mxu0 }
 0x3e9   : > { %v934_v7 = vmul.f32 0.17677669, %v928_v6  ;;  %v2246_v8 = vpop.f32.mrb[5].mxu0  ;;  %v2334_v6 = vld [vmem:[%s2980_s2 + $0x10] sm:$0xff]  }
 0x3ea   : > { %v931_v9 = vpop.f32.mrb[6].mxu0  ;;  %2271 = vmatpush3.bf16.msra.mxu0 %v2334_v6  ;;  %v2336_v8 = vld [vmem:[%s2980_s2 + $0x20] sm:$0xff]  }
 0x3eb   : > { %v2673_v10 = vpop.f32.mrb[8].mxu1  ;;  %v2247_v11 = vpop.f32.mrb[7].mxu0  ;;  %v935_v12 = vsel %vm656_vm3, %v934_v7, -1e+30  ;;  %2272 = vmatprep.subr.bf16.mxu0 %v2449_v4  ;;  %v2335_v7 = vld [vmem:[%s2980_s2 + $0x18] sm:$0xff]   ;;  %v2337_v9 = vld [vmem:[%s2980_s2 + $0x28] sm:$0xff]  }
 0x3ec   : > { %v2228_v13 = vpop.f32.mrb[9].mxu1  ;;  %v936_v14 = vsel %vm709_vm4, %v935_v12, -inf  ;;  %v2338_v11 = vld [vmem:[%s2980_s2 + $0x30] sm:$0xff]  }
 0x3ed   : > { %v766_v15 = vpop.f32.mrb[10].mxu1  ;;  %937 = vmax.xlane.f32.xlu0 %v936_v14  ;;  %v2376_v6 = vld [vmem:[%s2984_s6 + $0xc0] ss:$16 sps:$4 sm:$0xff]  }
 0x3ee   : > { %v2229_v16 = vpop.f32.mrb[11].mxu1  ;;  %2273 = vmatpush3.bf16.msra.mxu0 %v2335_v7  ;;  %v2379_v7 = vld [vmem:[%s2984_s6 + $0xc8] ss:$16 sps:$4 sm:$0xff]  }
 0x3ef   : > { %2274 = vmatprep.subr.bf16.mxu0 %v2449_v4  ;;  %v2339_v16 = vld [vmem:[%s2980_s2 + $0x38] sm:$0xff]  }
 0x3f0   : > { %v1040_v17 = vpop.f32.mrb[8].mxu0 }
 0x3f1   : > { %v2258_v18 = vpop.f32.mrb[9].mxu0  ;;  %v1046_v22 = vmul.f32 0.17677669, %v1040_v17 }
 0x3f2   : > { %v1043_v19 = vpop.f32.mrb[10].mxu0  ;;  %2275 = vmatpush3.bf16.msra.mxu0 %v2336_v8  ;;  %v2384_v8 = vld [vmem:[%s2984_s6 + $0xe4] ss:$16 sps:$4 sm:$0xff]  }
 0x3f3   : > { %v815_v20 = vpop.f32.mrb[12].mxu1  ;;  %v2259_v21 = vpop.f32.mrb[11].mxu0  ;;  %v1047_v30 = vsel %vm656_vm3, %v1046_v22, -1e+30  ;;  %2276 = vmatprep.subr.bf16.mxu0 %v2449_v4 }
 0x3f4   : > { %v821_v23 = vmul.f32 0.17677669, %v815_v20  ;;  %v2234_v25 = vpop.f32.mrb[13].mxu1  ;;  %v1048_v31 = vsel %vm709_vm4, %v1047_v30, -inf }
 0x3f5   : > { %v818_v26 = vpop.f32.mrb[14].mxu1 }
 0x3f6   : > { %v2235_v27 = vpop.f32.mrb[15].mxu1  ;;  %v822_v28 = vsel %vm656_vm3, %v821_v23, -1e+30  ;;  %2277 = vmatpush3.bf16.msra.mxu0 %v2337_v9  ;;  %v2387_v9 = vld [vmem:[%s2984_s6 + $0xec] ss:$16 sps:$4 sm:$0xff]  }
 0x3f7   : > { %v823_v29 = vsel %vm709_vm4, %v822_v28, -inf  ;;  %2278 = vmatprep.subr.bf16.mxu0 %v2449_v4 }
 0x3f8   : > { %824 = vmax.xlane.f32.xlu1 %v823_v29 }
 0x3fa   : > { %2279 = vmatpush3.bf16.msra.mxu0 %v2338_v11  ;;  %v2382_v11 = vld [vmem:[%s2984_s6 + $0xe0] ss:$16 sps:$4 sm:$0xff]  }
 0x3fb   : > { %2280 = vmatprep.subr.bf16.mxu0 %v2449_v4 }
 0x3fc   : > { %1049 = vmax.xlane.f32.xlu1 %v1048_v31 }
 0x3fe   : > { %2281 = vmatpush3.bf16.msra.mxu0 %v2339_v16 }
 0x47a   : > { %v938_v32 = vpop.xlane.xlu0 %937 }
 0x47b   : > { %v939_v33 = vsub.f32 %v935_v12, %v938_v32  ;;  %v2040_v32 = vld [vmem:[%s2981_s3] ss:$0 sm:$0xff] }
 0x47d   : > { %v940_v34 = vmul.f32 1.442695, %v939_v33  ;;  %v1237_v33 = vunpack.c.l.bf16 %v2607_v24  ;;  %v2345_v24 = vld [vmem:[%s2984_s6 + $0xc] ss:$16 sps:$4 sm:$0xff]  }
 0x47e   : > { %1561 = vmatprep.subr.bf16.mxu0 %v2345_v24  ;;  %v2408_v24 = vld [vmem:[%s2986_s8 + $0xe8] sm:$0xff]  }
 0x47f   : > { %2424 = vpow2.f32 %v940_v34 }
 0x485   : > { %v825_v36 = vpop.xlane.xlu1 %824 }
 0x486   : > { %v826_v37 = vsub.f32 %v822_v28, %v825_v36 }
 0x488   : > { %v827_v44 = vmul.f32 1.442695, %v826_v37 }
 0x489   : > { %v2425_v38 = vpop.eup %2424  ;;  %v1050_v39 = vpop.xlane.xlu1 %1049 }
 0x48a   : > { %v1051_v40 = vsub.f32 %v1047_v30, %v1050_v39  ;;  %v942_v43 = vsel %vm709_vm4, %v2425_v38, 0.0 }
 0x48b   : > { %943 = vadd.xlane.f32.xlu0 %v942_v43  ;;  %v2343_v43 = vld [vmem:[%s2984_s6 + $0x8] ss:$16 sps:$4 sm:$0xff]  }
 0x48c   : > { %v1052_v45 = vmul.f32 1.442695, %v1051_v40 }
 0x48e   : > { %2426 = vpow2.f32 %v1052_v45  ;;  %v2351_v45 = vld [vmem:[%s2984_s6 + $0x2c] ss:$16 sps:$4 sm:$0xff]  }
 0x48f   : > { %2428 = vpow2.f32 %v827_v44  ;;  %v2348_v44 = vld [vmem:[%s2984_s6 + $0x24] ss:$16 sps:$4 sm:$0xff]  }
 0x498   : > { %v2427_v42 = vpop.eup %2426 }
 0x499   : > { %v1054_v46 = vsel %vm709_vm4, %v2427_v42, 0.0  ;;  %v2429_v47 = vpop.eup %2428 }
 0x49a   : > { %1055 = vadd.xlane.f32.xlu1 %v1054_v46  ;;  %v829_v48 = vsel %vm709_vm4, %v2429_v47, 0.0  ;;  %v2349_v46 = vld [vmem:[%s2984_s6 + $0x28] ss:$16 sps:$4 sm:$0xff]  }
 0x49e   : > { %830 = vadd.xlane.f32.xlu1 %v829_v48  ;;  %v2357_v48 = vld [vmem:[%s2984_s6 + $0x4c] ss:$16 sps:$4 sm:$0xff]  }
 0x4a1   : > { %836 = vrot.lane.b32.xlu0 %v2638_v35, %s2451_s28 }
 0x4af   : > { %948 = vrot.lane.b32.xlu1 %v2638_v35, %s2452_s30 }
 0x4b3   : > { %1060 = vrot.lane.b32.xlu1 %v2638_v35, %s2453_s13 }
 0x518   : > { %v944_v49 = vpop.xlane.xlu0 %943 }
 0x51c   : > { %v837_v50 = vpop.permute.xlu0 %836 }
 0x51d   : > { %v842_v51 = vsel %vm725_vm2, %v837_v50, 0  ;;  %v2355_v50 = vld [vmem:[%s2984_s6 + $0x48] ss:$16 sps:$4 sm:$0xff]  }
 0x51e   : > { %2237 = vmatpush3.bf16.msra.mxu1 %v842_v51 }
 0x51f   : > { %2248 = vmatprep.subr.bf16.mxu1 %v2449_v4 }
 0x527   : > { %v1056_v52 = vpop.xlane.xlu1 %1055 }
 0x52b   : > { %v831_v53 = vpop.xlane.xlu1 %830 }
 0x52c   : > { %2430 = vrcp.f32 %v831_v53 }
 0x52d   : > { %2432 = vrcp.f32 %v944_v49  ;;  %v2352_v49 = vld [vmem:[%s2984_s6 + $0x40] ss:$16 sps:$4 sm:$0xff]  }
 0x52e   : > { %2434 = vrcp.f32 %v1056_v52 }
 0x52f   : > { %v949_v56 = vpop.permute.xlu1 %948 }
 0x530   : > { %v954_v59 = vsel %vm725_vm2, %v949_v56, 0  ;;  %v2363_v56 = vld [vmem:[%s2984_s6 + $0x6c] ss:$16 sps:$4 sm:$0xff]  }
 0x533   : > { %v1061_v60 = vpop.permute.xlu1 %1060 }
 0x534   : > { %v1066_v63 = vsel %vm725_vm2, %v1061_v60, 0  ;;  %v2364_v60 = vld [vmem:[%s2984_s6 + $0x80] ss:$16 sps:$4 sm:$0xff]  }
 0x536   : > { %v2431_v54 = vpop.eup %2430 }
 0x537   : > { %v833_v55 = vmul.f32 %v2431_v54, %v2429_v47  ;;  %v2433_v58 = vpop.eup %2432  ;;  %v2354_v47 = vld [vmem:[%s2984_s6 + $0x44] ss:$16 sps:$4 sm:$0xff]  }
 0x538   : > { %v946_v35 = vmul.f32 %v2433_v58, %v2425_v38  ;;  %v2435_v62 = vpop.eup %2434  ;;  %v2361_v58 = vld [vmem:[%s2984_s6 + $0x68] ss:$16 sps:$4 sm:$0xff]  }
 0x539   : > { %v834_v57 = vpack.c.bf16 %v833_v55, %v833_v55  ;;  %v1058_v0 = vmul.f32 %v2435_v62, %v2427_v42  ;;  %v2346_v42 = vld [vmem:[%s2984_s6 + $0x20] ss:$16 sps:$4 sm:$0xff]   ;;  %v2360_v55 = vld [vmem:[%s2984_s6 + $0x64] ss:$16 sps:$4 sm:$0xff]  }
 0x53a   : > { %v947_v61 = vpack.c.bf16 %v946_v35, %v946_v35  ;;  %v2369_v35 = vld [vmem:[%s2984_s6 + $0x8c] ss:$16 sps:$4 sm:$0xff]   ;;  %v2372_v62 = vld [vmem:[%s2984_s6 + $0xa4] ss:$16 sps:$4 sm:$0xff]  }
 0x53b   : > { %2239 = vmatmul.mubr.msk.bf16.vlgmr.msra.gmra.mrb[16].mxu1 %vm709_vm4, %v834_v57  ;;  %v1059_v1 = vpack.c.bf16 %v1058_v0, %v1058_v0  ;;  %v2358_v57 = vld [vmem:[%s2984_s6 + $0x60] ss:$16 sps:$4 sm:$0xff]  }
 0x53c   : > { %2249 = vmatpush3.bf16.msra.mxu1 %v954_v59  ;;  %2250 = vmatprep.mubr.msk.bf16.mxu1 %vm2450_vm0, %v2449_v4  ;;  %v2366_v59 = vld [vmem:[%s2984_s6 + $0x84] ss:$16 sps:$4 sm:$0xff]   ;;  %v2370_v0 = vld [vmem:[%s2984_s6 + $0xa0] ss:$16 sps:$4 sm:$0xff]  }
 0x53d   : > { %2260 = vmatprep.subr.bf16.mxu1 %v2449_v4 }
 0x543   : > { %2251 = vmatmul.mubr.msk.bf16.vlgmr.msra.gmra.mrb[20].mxu1 %vm709_vm4, %v947_v61  ;;  %v2367_v61 = vld [vmem:[%s2984_s6 + $0x88] ss:$16 sps:$4 sm:$0xff]  }
 0x544   : > { %2261 = vmatpush3.bf16.msra.mxu1 %v1066_v63  ;;  %2262 = vmatprep.mubr.msk.bf16.mxu1 %vm2450_vm0, %v2449_v4  ;;  %v2375_v63 = vld [vmem:[%s2984_s6 + $0xac] ss:$16 sps:$4 sm:$0xff]  }
 0x54b   : > { %2263 = vmatmul.mubr.msk.bf16.vlgmr.msra.gmra.mrb[24].mxu1 %vm709_vm4, %v1059_v1  ;;  %v2373_v1 = vld [vmem:[%s2984_s6 + $0xa8] ss:$16 sps:$4 sm:$0xff]  }
 0x54c   : > { %1408 = vmatprep.mubr.bf16.mxu1 %v2448_v2 }
 0x60e   : > { %v878_v12 = vpop.f32.mrb[16].mxu1 }
 0x60f   : > { %1109 = vrot.lane.b32.xlu0 %v878_v12, %s2453_s13  ;;  %v2240_v13 = vpop.f32.mrb[17].mxu1  ;;  %v2385_v12 = vld [vmem:[%s2984_s6 + $0xe8] ss:$16 sps:$4 sm:$0xff]  }
 0x610   : > { %v881_v14 = vpop.f32.mrb[18].mxu1  ;;  %v2388_v13 = vld [vmem:[%s2986_s8 + $0xc0] sm:$0xff]  }
 0x611   : > { %v2241_v15 = vpop.f32.mrb[19].mxu1  ;;  %v2389_v14 = vld [vmem:[%s2986_s8 + $0x40] sm:$0xff]  }
 0x616   : > { %v990_v17 = vpop.f32.mrb[20].mxu1 }
 0x617   : > { %1113 = vrot.lane.b32.xlu1 %v990_v17, %s2452_s30  ;;  %v2252_v18 = vpop.f32.mrb[21].mxu1 }
 0x618   : > { %v993_v19 = vpop.f32.mrb[22].mxu1 }
 0x619   : > { %v2253_v20 = vpop.f32.mrb[23].mxu1  ;;  %v2049_v19 = vld [vmem:[%s2982_s4] ss:$0 sm:$0xff] }
 0x61e   : > { %v1102_v21 = vpop.f32.mrb[24].mxu1 }
 0x61f   : > { %1117 = vrot.lane.b32.xlu0 %v1102_v21, %s2451_s28  ;;  %v2264_v22 = vpop.f32.mrb[25].mxu1  ;;  %v2050_v21 = vld [vmem:[%s2983_s5] ss:$0 sm:$0xff] }
 0x620   : > { %v1105_v23 = vpop.f32.mrb[26].mxu1 }
 0x621   : > { %v2265_v25 = vpop.f32.mrb[27].mxu1 }
 0x622   : > { %v2390_v25 = vld [vmem:[%s2986_s8 + $0x80] sm:$0xff]  }
 0x681   : > { %v1110_v26 = vpop.permute.xlu0 %1109 }
 0x682   : > { %v1120_v27 = vsel %vm660_vm1, %v2673_v10, %v1110_v26  ;;  %v2340_v10 = vld [vmem:[%s2984_s6] ss:$16 sps:$4 sm:$0xff]  }
 0x683   : > { %v2391_v26 = vld [vmem:[%s2986_s8] sm:$0xff]  }
 0x689   : > { %v1114_v4 = vpop.permute.xlu1 %1113 }
 0x68a   : > { %v1122_v28 = vsel %vm1121_vm5, %v1120_v27, %v1114_v4  ;;  %v2392_v27 = vld [vmem:[%s2986_s8 + $0xc8] sm:$0xff]  }
 0x691   : > { %v1118_v29 = vpop.permute.xlu0 %1117 }
 0x692   : > { %v1124_v30 = vsel %vm1123_vm6, %v1122_v28, %v1118_v29  ;;  %v2393_v28 = vld [vmem:[%s2986_s8 + $0x48] sm:$0xff]  }
 0x693   : > { %v1125_v31 = vpack.c.bf16 %v1124_v30, %v1124_v30  ;;  %v2394_v29 = vld [vmem:[%s2986_s8 + $0x88] sm:$0xff]  }
 0x694   : > { %v2395_v30 = vld [vmem:[%s2986_s8 + $0x8] sm:$0xff]  }
 0x695   : > { %2283 = vmatmul.mubr.bf16.vlgmr.msra.gmra.mrb[12].mxu0 %v1125_v31  ;;  %v2396_v31 = vld [vmem:[%s2986_s8 + $0xd0] sm:$0xff]  }
 0x696   : > { %1593 = vmatprep.mubr.bf16.mxu0 %v2448_v2  ;;  %v2342_v2 = vld [vmem:[%s2984_s6 + $0x4] ss:$16 sps:$4 sm:$0xff]   ;;  %1562 = vmatpush1.bf16.msra.mxu0 %v2343_v43 }
 0x697   : > { %1376 = vmatprep.subr.bf16.mxu1 %v2342_v2  ;;  %1563 = vmatprep.subr.bf16.mxu0 %v2351_v45  ;;  %v2406_v2 = vld [vmem:[%s2986_s8 + $0xa0] sm:$0xff]   ;;  %v2410_v45 = vld [vmem:[%s2986_s8 + $0xa8] sm:$0xff]  }
 0x698   : > { %1377 = vmatpush1.bf16.msra.mxu1 %v2340_v10  ;;  %v2405_v10 = vld [vmem:[%s2986_s8 + $0x60] sm:$0xff]  }
 0x699   : > { %1378 = vmatprep.subr.bf16.mxu1 %v2348_v44  ;;  %v2407_v43 = vld [vmem:[%s2986_s8 + $0x20] sm:$0xff]   ;;  %v2409_v44 = vld [vmem:[%s2986_s8 + $0x68] sm:$0xff]  }
 0x69a   : > { %1564 = vmatpush1.bf16.msra.mxu0 %v2349_v46  ;;  %v2412_v46 = vld [vmem:[%s2986_s8 + $0xf0] sm:$0xff]  }
 0x69b   : > { %1565 = vmatprep.subr.bf16.mxu0 %v2357_v48  ;;  %v2414_v48 = vld [vmem:[%s2986_s8 + $0xb0] sm:$0xff]  }
 0x69c   : > { %1379 = vmatpush1.bf16.msra.mxu1 %v2346_v42  ;;  %v2411_v42 = vld [vmem:[%s2986_s8 + $0x28] sm:$0xff]  }
 0x69d   : > { %1380 = vmatprep.subr.bf16.mxu1 %v2354_v47  ;;  %v2413_v47 = vld [vmem:[%s2986_s8 + $0x70] sm:$0xff]  }
 0x69e   : > { %1566 = vmatpush1.bf16.msra.mxu0 %v2355_v50  ;;  %v2416_v50 = vld [vmem:[%s2986_s8 + $0xf8] sm:$0xff]  }
 0x69f   : > { %1567 = vmatprep.subr.bf16.mxu0 %v2363_v56  ;;  %v1469_v56 = vld [vmem:[%s2985_s7 + $0x2] sm:$0x3] }
 0x6a0   : > { %1381 = vmatpush1.bf16.msra.mxu1 %v2352_v49  ;;  %v2415_v49 = vld [vmem:[%s2986_s8 + $0x30] sm:$0xff]  }
 0x6a1   : > { %1382 = vmatprep.subr.bf16.mxu1 %v2360_v55  ;;  %v1284_v55 = vld [vmem:[%s2985_s7] sm:$0x3] }
 0x6a2   : > { %1568 = vmatpush1.bf16.msra.mxu0 %v2361_v58 }
 0x6a3   : > { %1569 = vmatprep.subr.bf16.mxu0 %v2369_v35 }
 0x6a4   : > { %1383 = vmatpush1.bf16.msra.mxu1 %v2358_v57  ;;  %v1292_v57 = vsub.s32 1, %v2643_v41 }
 0x6a5   : > { %1384 = vmatprep.subr.bf16.mxu1 %v2366_v59 }
 0x6a6   : > { %1570 = vmatpush1.bf16.msra.mxu0 %v2367_v61  ;;  %v1293_v35 = vrot.slane %v1284_v55, %v1292_v57 }
 0x6a7   : > { %1571 = vmatprep.subr.bf16.mxu0 %v2375_v63 }
 0x6a8   : > { %1385 = vmatpush1.bf16.msra.mxu1 %v2364_v60  ;;  %v1478_v60 = vrot.slane %v1469_v56, %v1292_v57 }
 0x6a9   : > { %1386 = vmatprep.subr.bf16.mxu1 %v2372_v62 }
 0x6aa   : > { %1572 = vmatpush1.bf16.msra.mxu0 %v2373_v1 }
 0x6ab   : > { %1573 = vmatprep.subr.bf16.mxu0 %v2381_v5 }
 0x6ac   : > { %1387 = vmatpush1.bf16.msra.mxu1 %v2370_v0 }
 0x6ad   : > { %1388 = vmatprep.subr.bf16.mxu1 %v2378_v3 }
 0x6ae   : > { %1574 = vmatpush1.bf16.msra.mxu0 %v2379_v7 }
 0x6af   : > { %1575 = vmatprep.subr.bf16.mxu0 %v2387_v9 }
 0x6b0   : > { %1389 = vmatpush1.bf16.msra.mxu1 %v2376_v6 }
 0x6b1   : > { %1390 = vmatprep.subr.bf16.mxu1 %v2384_v8 }
 0x6b2   : > { %1576 = vmatpush1.bf16.msra.mxu0 %v2385_v12 }
 0x6b3   : > { %2176 = vmatprep.subr.bf16.mxu0 %v2389_v14 }
 0x6b4   : > { %1391 = vmatpush1.bf16.msra.mxu1 %v2382_v11 }
 0x6b5   : > { %2154 = vmatprep.subr.bf16.mxu1 %v2388_v13 }
 0x768   : > { %v1231_v34 = vpop.f32.mrb[12].mxu0 }
 0x769   : > { %v1232_v36 = vadd.f32 %v2040_v32, %v1231_v34  ;;  %v2284_v37 = vpop.f32.mrb[13].mxu0  ;;  %v2397_v32 = vld [vmem:[%s2986_s8 + $0x50] sm:$0xff]  }
 0x76a   : > { %v1234_v38 = vpop.f32.mrb[14].mxu0  ;;  %v2399_v34 = vld [vmem:[%s2986_s8 + $0x10] sm:$0xff]   ;;  %v2401_v37 = vld [vmem:[%s2986_s8 + $0x58] sm:$0xff]  }
 0x76b   : > { %v2285_v39 = vpop.f32.mrb[15].mxu0  ;;  %v1238_v40 = vadd.f32 %v1237_v33, %v1232_v36  ;;  %v2398_v33 = vld [vmem:[%s2986_s8 + $0x90] sm:$0xff]   ;;  %v2400_v36 = vld [vmem:[%s2986_s8 + $0xd8] sm:$0xff]  }
 0x76c   : > { %v2402_v38 = vld [vmem:[%s2986_s8 + $0x98] sm:$0xff]  }
 0x76d   : > { %1241 = vadd.xlane.f32.xlu1 %v1238_v40  ;;  %v2403_v39 = vld [vmem:[%s2986_s8 + $0x18] sm:$0xff]  }
 0x7fa   : > { %v1242_v51 = vpop.xlane.xlu1 %1241 }
 0x7fb   : > { %v1244_v52 = vmul.f32 0.0078125, %v1242_v51  ;;  %v2417_v51 = vld [vmem:[%s2986_s8 + $0x78] sm:$0xff]  }
 0x7fd   : > { %v1245_v53 = vsub.f32 %v1238_v40, %v1244_v52  ;;  %v2404_v40 = vld [vmem:[%s2986_s8 + $0xe0] sm:$0xff]   ;;  %v2418_v52 = vld [vmem:[%s2986_s8 + $0xb8] sm:$0xff]  }
 0x7ff   : > { %v1246_v54 = vmul.f32 %v1245_v53, %v1245_v53 }
 0x801   : > { %1247 = vadd.xlane.f32.xlu0 %v1246_v54  ;;  %v1288_v54 = vsub.s32 0, %v2643_v41 }
 0x803   : > { %v1289_v58 = vrot.slane %v1284_v55, %v1288_v54  ;;  %v1474_v59 = vrot.slane %v1469_v56, %v1288_v54 }
 0x88e   : > { %v1248_v15 = vpop.xlane.xlu0 %1247 }
 0x88f   : > { %v1249_v16 = vmul.f32 0.0078125, %v1248_v15 }
 0x891   : > { %v1250_v17 = vadd.f32 1e-05, %v1249_v16 }
 0x893   : > { %2436 = vrsqrt.f32 %v1250_v17 }
 0x89d   : > { %v2437_v18 = vpop.eup %2436 }
 0x89e   : > { %v1252_v20 = vmul.f32 %v2437_v18, %v1245_v53  ;;  %v2419_v53 = vld [vmem:[%s2986_s8 + $0x38] sm:$0xff]  }
 0x8a0   : > { %v1259_v22 = vmul.f32 %v2049_v19, %v1252_v20 }
 0x8a2   : > { %v2858_v23 = vadd.f32 %v2050_v21, %v1259_v22 }
 0x8a4   : > { %v1267_v4 = vpack.c.bf16 %v2858_v23, %v2858_v23 }
 0x8a6   : > { %1409 = vmatmul.mubr.bf16.vlgmr.msra.gmra.mrb[28].mxu1 %v1267_v4  ;;  %1594 = vmatmul.mubr.bf16.vlgmr.msra.gmra.mrb[16].mxu0 %v1267_v4 }
 0x8a7   : > { %2155 = vmatpush3.bf16.msra.mxu1 %v2390_v25  ;;  %2177 = vmatpush3.bf16.msra.mxu0 %v2391_v26 }
 0x8a8   : > { %2156 = vmatprep.subr.bf16.mxu1 %v2392_v27  ;;  %2178 = vmatprep.subr.bf16.mxu0 %v2393_v28 }
 0x8ab   : > { %2157 = vmatpush3.bf16.msra.mxu1 %v2394_v29  ;;  %2179 = vmatpush3.bf16.msra.mxu0 %v2395_v30  ;;  %v2115_v30 = vld [vmem:[%s2987_s9] ss:$0 sm:$0xff] }
 0x8ac   : > { %2158 = vmatprep.subr.bf16.mxu1 %v2396_v31  ;;  %2180 = vmatprep.subr.bf16.mxu0 %v2397_v32 }
 0x8af   : > { %2159 = vmatpush3.bf16.msra.mxu1 %v2398_v33  ;;  %2181 = vmatpush3.bf16.msra.mxu0 %v2399_v34 }
 0x8b0   : > { %2160 = vmatprep.subr.bf16.mxu1 %v2400_v36  ;;  %2182 = vmatprep.subr.bf16.mxu0 %v2401_v37 }
 0x8b3   : > { %2161 = vmatpush3.bf16.msra.mxu1 %v2402_v38  ;;  %2183 = vmatpush3.bf16.msra.mxu0 %v2403_v39 }
 0x8b4   : > { %2162 = vmatprep.subr.bf16.mxu1 %v2404_v40  ;;  %2184 = vmatprep.subr.bf16.mxu0 %v2405_v10 }
 0x8b7   : > { %2163 = vmatpush3.bf16.msra.mxu1 %v2406_v2  ;;  %2185 = vmatpush3.bf16.msra.mxu0 %v2407_v43  ;;  %v2116_v43 = vld [vmem:[%s2988_s10] ss:$0 sm:$0xff] }
 0x8b8   : > { %2164 = vmatprep.subr.bf16.mxu1 %v2408_v24  ;;  %2186 = vmatprep.subr.bf16.mxu0 %v2409_v44 }
 0x8bb   : > { %2165 = vmatpush3.bf16.msra.mxu1 %v2410_v45  ;;  %2187 = vmatpush3.bf16.msra.mxu0 %v2411_v42 }
 0x8bc   : > { %2166 = vmatprep.subr.bf16.mxu1 %v2412_v46  ;;  %2188 = vmatprep.subr.bf16.mxu0 %v2413_v47 }
 0x8bf   : > { %2167 = vmatpush3.bf16.msra.mxu1 %v2414_v48  ;;  %2189 = vmatpush3.bf16.msra.mxu0 %v2415_v49 }
 0x8c0   : > { %2168 = vmatprep.subr.bf16.mxu1 %v2416_v50  ;;  %2190 = vmatprep.subr.bf16.mxu0 %v2417_v51 }
 0x8c3   : > { %2169 = vmatpush3.bf16.msra.mxu1 %v2418_v52  ;;  %2191 = vmatpush3.bf16.msra.mxu0 %v2419_v53 }
 0x979   : > { %v1410_v61 = vpop.f32.mrb[28].mxu1  ;;  %v1595_v62 = vpop.f32.mrb[16].mxu0 }
 0x97a   : > { %v1411_v63 = vadd.f32 %v1410_v61, %v1289_v58  ;;  %v1596_v0 = vadd.f32 %v1595_v62, %v1474_v59  ;;  %v1412_v1 = vpop.f32.mrb[29].mxu1  ;;  %v1597_v3 = vpop.f32.mrb[17].mxu0 }
 0x97b   : > { %v1413_v5 = vadd.f32 %v1412_v1, %v1293_v35  ;;  %v1598_v6 = vadd.f32 %v1597_v3, %v1478_v60  ;;  %v1414_v7 = vpop.f32.mrb[30].mxu1  ;;  %v1599_v8 = vpop.f32.mrb[18].mxu0 }
 0x97c   : > { %v1417_v9 = vmax.f32 %v1411_v63, 0.0  ;;  %v1602_v11 = vmax.f32 %v1596_v0, 0.0  ;;  %v1415_v12 = vpop.f32.mrb[31].mxu1  ;;  %v1600_v13 = vpop.f32.mrb[19].mxu0 }
 0x97d   : > { %v1418_v14 = vmax.f32 %v1413_v5, 0.0  ;;  %v1603_v41 = vmax.f32 %v1598_v6, 0.0 }
 0x97e   : > { %v1419_v17 = vpack.c.bf16 %v1417_v9, %v1417_v9  ;;  %v1604_v18 = vpack.c.bf16 %v1602_v11, %v1602_v11 }
 0x97f   : > { %v1420_v15 = vpack.c.bf16 %v1418_v14, %v1418_v14  ;;  %v1605_v16 = vpack.c.bf16 %v1603_v41, %v1603_v41 }
 0x981   : > { %1766 = vmatprep.mubr.bf16.mxu1 %v1605_v16  ;;  %1902 = vmatprep.mubr.bf16.mxu0 %v1420_v15 }
 0x982   : > { %1767 = vmatmul.mubr.bf16.vlgmr.msra.gmra.mrb[32].mxu1 %v1604_v18  ;;  %1903 = vmatmul.mubr.bf16.vlgmr.msra.gmra.mrb[20].mxu0 %v1419_v17 }
 0xa55   : > { %v2170_v19 = vpop.f32.mrb[32].mxu1  ;;  %v2192_v20 = vpop.f32.mrb[20].mxu0 }
 0xa56   : > { %v2171_v21 = vpop.f32.mrb[33].mxu1  ;;  %v2193_v22 = vpop.f32.mrb[21].mxu0 }
 0xa57   : > { %v2172_v25 = vadd.f32 %v2171_v21, %v2170_v19  ;;  %v2194_v26 = vadd.f32 %v2193_v22, %v2192_v20  ;;  %v2173_v4 = vpop.f32.mrb[34].mxu1  ;;  %v2195_v27 = vpop.f32.mrb[22].mxu0 }
 0xa58   : > { %v2174_v28 = vpop.f32.mrb[35].mxu1  ;;  %v2196_v29 = vpop.f32.mrb[23].mxu0 }
 0xa59   : > { %v1905_v31 = vadd.f32 %v2194_v26, %v2172_v25 }
 0xa5b   : > { %v1917_v32 = vadd.f32 %v2115_v30, %v1905_v31 }
 0xa5d   : > { %v1918_v33 = vadd.f32 %v1917_v32, %v2858_v23  ;;  %v2117_v23 = vld [vmem:[%s2989_s11] ss:$0 sm:$0xff] }
 0xa5f   : > { %1921 = vadd.xlane.f32.xlu0 %v1918_v33 }
 0xaec   : > { %v1922_v34 = vpop.xlane.xlu0 %1921 }
 0xaed   : > { %v1923_v36 = vmul.f32 0.0078125, %v1922_v34 }
 0xaef   : > { %v1924_v37 = vsub.f32 %v1918_v33, %v1923_v36 }
 0xaf1   : > { %v1925_v38 = vmul.f32 %v1924_v37, %v1924_v37 }
 0xaf3   : > { %1926 = vadd.xlane.f32.xlu1 %v1925_v38 }
 0xb80   : > { %v1927_v39 = vpop.xlane.xlu1 %1926 }
 0xb81   : > { %v1928_v40 = vmul.f32 0.0078125, %v1927_v39 }
 0xb83   : > { %v1929_v10 = vadd.f32 1e-05, %v1928_v40 }
 0xb85   : > { %2438 = vrsqrt.f32 %v1929_v10 }
 0xb8f   : > { %v2439_v2 = vpop.eup %2438 }
 0xb90   : > { %v1931_v24 = vmul.f32 %v2439_v2, %v1924_v37 }
 0xb92   : > { %v1938_v44 = vmul.f32 %v2116_v43, %v1931_v24 }
 0xb94   : > { %v1945_v45 = vadd.f32 %v2117_v23, %v1938_v44 }
 0xb96   : > { %v1946_v42 = vpack.c.bf16 %v1945_v45, %v1945_v45 }
 0xb98   : > { %1947 = vst [vmem:[%s408_s14] sm:$0xf] %v1946_v42 }
 0xb99 PF: > { %s22_s21 = sadd.s32 1, %s2446_s21  }
 0xb9a   : > { %p19_p4 = scmp.ge.s32.totalorder %s22_s21, 4  }
 0xb9c   :  { %21 = sbr.rel (!%p19_p4) target bundleno = 1 (0x1), region = 98 }

</bundles_post_ra>
